<compile_context>
chip_gen: v6e
topology: v6e:2x2x1
jax: 0.10.0
libtpu: 0.0.40
codegen_flags: <defaults>
</compile_context>

<pallas_src>
import functools

import numpy as np

import jax
import jax.numpy as jnp
from jax import lax
from jax.experimental import pallas as pl
from jax.experimental.pallas import tpu as pltpu


def _round_up(x, m):
    return (x + m - 1) // m * m


def conv1_fused_kernel(x_ref, w_ref, m_ref, b_ref, e_ref, o_ref, *,
                       tap_starts, oc, kpad):
    """Fused conv1 + (x + a)*b - c  (bias/a/c pre-folded into e).

    x_ref: (1, C, KPAD)        one batch element, flattened + lane-padded spatial raster
    w_ref: (T*OC, C)           stage-1 weights, tap t occupies rows [t*OC, (t+1)*OC)
    m_ref: (MROWS, NPAD) bf16  shared row-shifted 0/1 selection matrix
    b_ref: (OC, NPAD)          constant_b, NCHW raster order, lane-padded
    e_ref: (OC, NPAD)          folded (a + bias)*b - c, lane-padded
    o_ref: (1, OC, NPAD)       output (lane-dense, NCHW raster order)
    """
    x = x_ref[0]                                                     # (C, KPAD)
    # Stage 1: all taps' (OC, C) weight matrices in ONE MXU issue.
    p = jnp.dot(w_ref[...], x, preferred_element_type=jnp.float32)  # (T*OC, KPAD)
    # Shared selection matrix: single bf16 -> f32 cast per body.
    m_all = m_ref[...].astype(jnp.float32)                          # (MROWS, NPAD)

    npad = b_ref.shape[-1]
    acc = jnp.zeros((oc, npad), jnp.float32)
    for t, s in enumerate(tap_starts):                               # static, unrolled
        p_t = p[t * oc:(t + 1) * oc, :]                              # sublane-aligned, free
        m_t = m_all[s:s + kpad, :]                                   # static sublane shift (XLU)
        # On v7x Mosaic can keep this accumulation inside the MXU result buffer.
        acc = acc + jnp.dot(p_t, m_t, preferred_element_type=jnp.float32)

    # Folded epilogue:  (conv + bias + a) * b - c  ==  conv * b + e
    o_ref[0] = acc * b_ref[...] + e_ref[...]


def prepare_conv1_params(w, bias, const_a, const_b, const_c, stride, in_hw):
    """One-off build-time packing of every static operand of the kernel."""
    w = np.asarray(w)
    bias = np.asarray(bias)
    const_a = np.asarray(const_a)
    const_b = np.asarray(const_b)
    const_c = np.asarray(const_c)

    OC, C, KH, KW = w.shape
    H, W = in_hw
    OH = (H - KH) // stride + 1
    OW = (W - KW) // stride + 1
    assert const_a.shape == (1, OC, OH, OW), (const_a.shape, (1, OC, OH, OW))

    K, N = H * W, OH * OW
    KPAD, NPAD = _round_up(K, 128), _round_up(N, 128)
    max_off = (KH - 1) * W + (KW - 1)
    MROWS = _round_up(KPAD + max_off, 8)

    # Stage-1 weights, stacked vertically: rows [t*OC, (t+1)*OC) = w[:, :, kh, kw].
    w_stack = np.transpose(w, (2, 3, 0, 1)).reshape(KH * KW * OC, C).astype(np.float32)

    # Shared row-shifted 0/1 selection matrix (bf16 is exact for 0/1).
    i = np.arange(N)
    base = (i // OW) * stride * W + (i % OW) * stride     # flat input index of (oh, ow) tap(0,0)
    m_big = np.zeros((MROWS, NPAD), np.float32)
    m_big[base + max_off, i] = 1.0

    # Per-tap static sublane start offsets: tap t view = m_big[start_t : start_t + KPAD].
    tap_starts = tuple(int(max_off - ((t // KW) * W + (t % KW))) for t in range(KH * KW))

    # Folded epilogue constants in lane-dense NCHW raster order, lane-padded to NPAD.
    b_img = const_b[0].reshape(OC, N)
    e_img = ((const_a[0] + bias[:, None, None]) * const_b[0] - const_c[0]).reshape(OC, N)
    b_pack = np.zeros((OC, NPAD), np.float32); b_pack[:, :N] = b_img
    e_pack = np.zeros((OC, NPAD), np.float32); e_pack[:, :N] = e_img

    params = (
        jnp.asarray(w_stack),
        jnp.asarray(m_big, dtype=jnp.bfloat16),
        jnp.asarray(b_pack),
        jnp.asarray(e_pack),
    )
    meta = dict(C=C, OC=OC, H=H, W=W, OH=OH, OW=OW, K=K, N=N,
                KPAD=KPAD, NPAD=NPAD, MROWS=MROWS,
                n_taps=KH * KW, tap_starts=tap_starts)
    return params, meta


def make_forward(meta):
    """Returns jitted forward(x, w_stack, m_big, b_pack, e_pack) -> (B, OC, OH, OW)."""
    C, OC = meta["C"], meta["OC"]
    H, W, OH, OW = meta["H"], meta["W"], meta["OH"], meta["OW"]
    K, N, KPAD, NPAD = meta["K"], meta["N"], meta["KPAD"], meta["NPAD"]
    MROWS, n_taps, tap_starts = meta["MROWS"], meta["n_taps"], meta["tap_starts"]

    kernel = functools.partial(conv1_fused_kernel,
                               tap_starts=tap_starts, oc=OC, kpad=KPAD)

    @jax.jit
    def forward(x, w_stack, m_big, b_pack, e_pack):
        B = x.shape[0]
        assert x.shape == (B, C, H, W), x.shape
        # Contiguous reshape (free) + small zero-pad of the lane dim 200 -> 256.
        x_flat = jnp.pad(x.reshape(B, C, K), ((0, 0), (0, 0), (0, KPAD - K)))

        const_map = lambda b: (0, 0)   # constants stay VMEM-resident across the batch grid
        out = pl.pallas_call(
            kernel,
            out_shape=jax.ShapeDtypeStruct((B, OC, NPAD), jnp.float32),
            grid=(B,),
            in_specs=[
                pl.BlockSpec((1, C, KPAD), lambda b: (b, 0, 0)),   # x: pipelined per batch
                pl.BlockSpec((n_taps * OC, C), const_map),          # stacked stage-1 weights
                pl.BlockSpec((MROWS, NPAD), const_map),             # shared selection matrix
                pl.BlockSpec((OC, NPAD), const_map),                # constant_b
                pl.BlockSpec((OC, NPAD), const_map),                # folded epilogue e
            ],
            out_specs=pl.BlockSpec((1, OC, NPAD), lambda b: (b, 0, 0)),
            compiler_params=pltpu.CompilerParams(
                dimension_semantics=("parallel",)),
        )(x_flat, w_stack, m_big, b_pack, e_pack)

        # Drop lane padding; contiguous reshape back to NCHW.
        return out[:, :, :N].reshape(B, OC, OH, OW)

    return forward


# TODO(synk): the `out = torch.matmul(x, constant_d)` / simulation() / conv2..conv4 /
# ReLU chain in the PyTorch forward never reaches the returned value (forward returns
# the pre-branch `x` and nothing mutates it in place), so that dead branch is
# intentionally not implemented here.


if __name__ == "__main__":
    key = jax.random.PRNGKey(0)
    k = jax.random.split(key, 6)

    # Shapes implied by the module: the constants are (1, 16, 18, 8), so conv1 must
    # produce OC=16 with spatial (18, 8).  With kernel_size=3, stride=1 that means
    # input spatial (20, 10).  in_channels=4, batch=2 (constants broadcast over batch).
    B, in_channels, out_channels, kernel_size, stride = 2, 4, 16, 3, 1
    H, W = 20, 10
    OH, OW = 18, 8

    x = jax.random.normal(k[0], (B, in_channels, H, W), dtype=jnp.float32)
    conv1_w = 0.1 * jax.random.normal(
        k[1], (out_channels, in_channels, kernel_size, kernel_size), dtype=jnp.float32)
    conv1_b = 0.1 * jax.random.normal(k[2], (out_channels,), dtype=jnp.float32)
    const_a = jax.random.normal(k[3], (1, out_channels, OH, OW), dtype=jnp.float32)
    const_b = jax.random.normal(k[4], (1, out_channels, OH, OW), dtype=jnp.float32)
    const_c = jax.random.normal(k[5], (1, out_channels, OH, OW), dtype=jnp.float32)

    params, meta = prepare_conv1_params(conv1_w, conv1_b, const_a, const_b, const_c,
                                        stride, (H, W))
    forward = make_forward(meta)

    out = forward(x, *params)
    out = jax.block_until_ready(out)

    # Pure-JAX reference for the returned path of the PyTorch module.
    ref = lax.conv_general_dilated(
        x, conv1_w, window_strides=(stride, stride), padding="VALID",
        dimension_numbers=("NCHW", "OIHW", "NCHW"))
    ref = ref + conv1_b.reshape(1, -1, 1, 1)
    ref = (ref + const_a) * const_b - const_c

    assert out.shape == (B, out_channels, OH, OW), out.shape
    assert jnp.allclose(out, ref, atol=1e-4, rtol=1e-4), float(jnp.max(jnp.abs(out - ref)))
    print("KERNEL_OK")
</pallas_src>

<mosaic_0001>
module attributes {stable_mosaic.version = 11 : i64} {
  func.func @conv1_fused_kernel(%arg0: i32, %arg1: memref<1x4x256xf32, #tpu.memory_space<vmem>>, %arg2: memref<144x4xf32, #tpu.memory_space<vmem>>, %arg3: memref<280x256xbf16, #tpu.memory_space<vmem>>, %arg4: memref<16x256xf32, #tpu.memory_space<vmem>>, %arg5: memref<16x256xf32, #tpu.memory_space<vmem>>, %arg6: memref<1x16x256xf32, #tpu.memory_space<vmem>>) attributes {dimension_semantics = [#tpu.dimension_semantics<parallel>], iteration_bounds = array<i64: 2>, scalar_prefetch = 0 : i64, scratch_operands = 0 : i64, tpu.core_type = #tpu.core_type<tc>, window_params = [{transform_indices = @transform_0, window_bounds = array<i64: 1, 4, 256>}, {pipeline_mode = #tpu.pipeline_mode<synchronous>, transform_indices = @transform_1, window_bounds = array<i64: 144, 4>}, {pipeline_mode = #tpu.pipeline_mode<synchronous>, transform_indices = @transform_2, window_bounds = array<i64: 280, 256>}, {pipeline_mode = #tpu.pipeline_mode<synchronous>, transform_indices = @transform_3, window_bounds = array<i64: 16, 256>}, {pipeline_mode = #tpu.pipeline_mode<synchronous>, transform_indices = @transform_4, window_bounds = array<i64: 16, 256>}, {transform_indices = @transform_5, window_bounds = array<i64: 1, 16, 256>}]} {
    %c0 = arith.constant 0 : index
    %c0_0 = arith.constant 0 : index
    %c0_1 = arith.constant 0 : index
    %0 = vector.load %arg1[%c0, %c0_0, %c0_1] : memref<1x4x256xf32, #tpu.memory_space<vmem>>, vector<1x4x256xf32>
    %1 = vector.shape_cast %0 : vector<1x4x256xf32> to vector<4x256xf32>
    %c0_2 = arith.constant 0 : index
    %c0_3 = arith.constant 0 : index
    %2 = vector.load %arg2[%c0_2, %c0_3] : memref<144x4xf32, #tpu.memory_space<vmem>>, vector<144x4xf32>
    %cst = arith.constant dense<0.000000e+00> : vector<144x256xf32>
    %3 = tpu.matmul %2, %1, %cst {dimension_numbers = #tpu.dot_dimension_numbers<[1], [0], [0], [1], [0, 0, 1, 1], [], []>} : vector<144x4xf32>, vector<4x256xf32>, vector<144x256xf32> -> vector<144x256xf32>
    %c0_4 = arith.constant 0 : index
    %c0_5 = arith.constant 0 : index
    %4 = vector.load %arg3[%c0_4, %c0_5] : memref<280x256xbf16, #tpu.memory_space<vmem>>, vector<280x256xbf16>
    %5 = arith.extf %4 : vector<280x256xbf16> to vector<280x256xf32>
    %cst_6 = arith.constant 0.000000e+00 : f32
    %6 = vector.broadcast %cst_6 : f32 to vector<16x256xf32>
    %7 = vector.extract_strided_slice %3 {offsets = [0, 0], sizes = [16, 256], strides = [1, 1]} : vector<144x256xf32> to vector<16x256xf32>
    %8 = vector.extract_strided_slice %5 {offsets = [22, 0], sizes = [256, 256], strides = [1, 1]} : vector<280x256xf32> to vector<256x256xf32>
    %cst_7 = arith.constant dense<0.000000e+00> : vector<16x256xf32>
    %9 = tpu.matmul %7, %8, %cst_7 {dimension_numbers = #tpu.dot_dimension_numbers<[1], [0], [0], [1], [0, 0, 1, 1], [], []>} : vector<16x256xf32>, vector<256x256xf32>, vector<16x256xf32> -> vector<16x256xf32>
    %10 = arith.addf %6, %9 : vector<16x256xf32>
    %11 = vector.extract_strided_slice %3 {offsets = [16, 0], sizes = [16, 256], strides = [1, 1]} : vector<144x256xf32> to vector<16x256xf32>
    %12 = vector.extract_strided_slice %5 {offsets = [21, 0], sizes = [256, 256], strides = [1, 1]} : vector<280x256xf32> to vector<256x256xf32>
    %cst_8 = arith.constant dense<0.000000e+00> : vector<16x256xf32>
    %13 = tpu.matmul %11, %12, %cst_8 {dimension_numbers = #tpu.dot_dimension_numbers<[1], [0], [0], [1], [0, 0, 1, 1], [], []>} : vector<16x256xf32>, vector<256x256xf32>, vector<16x256xf32> -> vector<16x256xf32>
    %14 = arith.addf %10, %13 : vector<16x256xf32>
    %15 = vector.extract_strided_slice %3 {offsets = [32, 0], sizes = [16, 256], strides = [1, 1]} : vector<144x256xf32> to vector<16x256xf32>
    %16 = vector.extract_strided_slice %5 {offsets = [20, 0], sizes = [256, 256], strides = [1, 1]} : vector<280x256xf32> to vector<256x256xf32>
    %cst_9 = arith.constant dense<0.000000e+00> : vector<16x256xf32>
    %17 = tpu.matmul %15, %16, %cst_9 {dimension_numbers = #tpu.dot_dimension_numbers<[1], [0], [0], [1], [0, 0, 1, 1], [], []>} : vector<16x256xf32>, vector<256x256xf32>, vector<16x256xf32> -> vector<16x256xf32>
    %18 = arith.addf %14, %17 : vector<16x256xf32>
    %19 = vector.extract_strided_slice %3 {offsets = [48, 0], sizes = [16, 256], strides = [1, 1]} : vector<144x256xf32> to vector<16x256xf32>
    %20 = vector.extract_strided_slice %5 {offsets = [12, 0], sizes = [256, 256], strides = [1, 1]} : vector<280x256xf32> to vector<256x256xf32>
    %cst_10 = arith.constant dense<0.000000e+00> : vector<16x256xf32>
    %21 = tpu.matmul %19, %20, %cst_10 {dimension_numbers = #tpu.dot_dimension_numbers<[1], [0], [0], [1], [0, 0, 1, 1], [], []>} : vector<16x256xf32>, vector<256x256xf32>, vector<16x256xf32> -> vector<16x256xf32>
    %22 = arith.addf %18, %21 : vector<16x256xf32>
    %23 = vector.extract_strided_slice %3 {offsets = [64, 0], sizes = [16, 256], strides = [1, 1]} : vector<144x256xf32> to vector<16x256xf32>
    %24 = vector.extract_strided_slice %5 {offsets = [11, 0], sizes = [256, 256], strides = [1, 1]} : vector<280x256xf32> to vector<256x256xf32>
    %cst_11 = arith.constant dense<0.000000e+00> : vector<16x256xf32>
    %25 = tpu.matmul %23, %24, %cst_11 {dimension_numbers = #tpu.dot_dimension_numbers<[1], [0], [0], [1], [0, 0, 1, 1], [], []>} : vector<16x256xf32>, vector<256x256xf32>, vector<16x256xf32> -> vector<16x256xf32>
    %26 = arith.addf %22, %25 : vector<16x256xf32>
    %27 = vector.extract_strided_slice %3 {offsets = [80, 0], sizes = [16, 256], strides = [1, 1]} : vector<144x256xf32> to vector<16x256xf32>
    %28 = vector.extract_strided_slice %5 {offsets = [10, 0], sizes = [256, 256], strides = [1, 1]} : vector<280x256xf32> to vector<256x256xf32>
    %cst_12 = arith.constant dense<0.000000e+00> : vector<16x256xf32>
    %29 = tpu.matmul %27, %28, %cst_12 {dimension_numbers = #tpu.dot_dimension_numbers<[1], [0], [0], [1], [0, 0, 1, 1], [], []>} : vector<16x256xf32>, vector<256x256xf32>, vector<16x256xf32> -> vector<16x256xf32>
    %30 = arith.addf %26, %29 : vector<16x256xf32>
    %31 = vector.extract_strided_slice %3 {offsets = [96, 0], sizes = [16, 256], strides = [1, 1]} : vector<144x256xf32> to vector<16x256xf32>
    %32 = vector.extract_strided_slice %5 {offsets = [2, 0], sizes = [256, 256], strides = [1, 1]} : vector<280x256xf32> to vector<256x256xf32>
    %cst_13 = arith.constant dense<0.000000e+00> : vector<16x256xf32>
    %33 = tpu.matmul %31, %32, %cst_13 {dimension_numbers = #tpu.dot_dimension_numbers<[1], [0], [0], [1], [0, 0, 1, 1], [], []>} : vector<16x256xf32>, vector<256x256xf32>, vector<16x256xf32> -> vector<16x256xf32>
    %34 = arith.addf %30, %33 : vector<16x256xf32>
    %35 = vector.extract_strided_slice %3 {offsets = [112, 0], sizes = [16, 256], strides = [1, 1]} : vector<144x256xf32> to vector<16x256xf32>
    %36 = vector.extract_strided_slice %5 {offsets = [1, 0], sizes = [256, 256], strides = [1, 1]} : vector<280x256xf32> to vector<256x256xf32>
    %cst_14 = arith.constant dense<0.000000e+00> : vector<16x256xf32>
    %37 = tpu.matmul %35, %36, %cst_14 {dimension_numbers = #tpu.dot_dimension_numbers<[1], [0], [0], [1], [0, 0, 1, 1], [], []>} : vector<16x256xf32>, vector<256x256xf32>, vector<16x256xf32> -> vector<16x256xf32>
    %38 = arith.addf %34, %37 : vector<16x256xf32>
    %39 = vector.extract_strided_slice %3 {offsets = [128, 0], sizes = [16, 256], strides = [1, 1]} : vector<144x256xf32> to vector<16x256xf32>
    %40 = vector.extract_strided_slice %5 {offsets = [0, 0], sizes = [256, 256], strides = [1, 1]} : vector<280x256xf32> to vector<256x256xf32>
    %cst_15 = arith.constant dense<0.000000e+00> : vector<16x256xf32>
    %41 = tpu.matmul %39, %40, %cst_15 {dimension_numbers = #tpu.dot_dimension_numbers<[1], [0], [0], [1], [0, 0, 1, 1], [], []>} : vector<16x256xf32>, vector<256x256xf32>, vector<16x256xf32> -> vector<16x256xf32>
    %42 = arith.addf %38, %41 : vector<16x256xf32>
    %c0_16 = arith.constant 0 : index
    %c0_17 = arith.constant 0 : index
    %43 = vector.load %arg4[%c0_16, %c0_17] : memref<16x256xf32, #tpu.memory_space<vmem>>, vector<16x256xf32>
    %44 = arith.mulf %42, %43 : vector<16x256xf32>
    %c0_18 = arith.constant 0 : index
    %c0_19 = arith.constant 0 : index
    %45 = vector.load %arg5[%c0_18, %c0_19] : memref<16x256xf32, #tpu.memory_space<vmem>>, vector<16x256xf32>
    %46 = arith.addf %44, %45 : vector<16x256xf32>
    %c0_20 = arith.constant 0 : index
    %c0_21 = arith.constant 0 : index
    %c0_22 = arith.constant 0 : index
    %47 = vector.load %arg6[%c0_20, %c0_21, %c0_22] : memref<1x16x256xf32, #tpu.memory_space<vmem>>, vector<1x16x256xf32>
    %48 = vector.shape_cast %47 : vector<1x16x256xf32> to vector<16x256xf32>
    %49 = vector.shape_cast %46 : vector<16x256xf32> to vector<1x16x256xf32>
    tpu.vector_store %arg6[%c0_20, %c0_21, %c0_22], %49 {strides = array<i32>} : memref<1x16x256xf32, #tpu.memory_space<vmem>>, vector<1x16x256xf32>,
    return
  }
  func.func @transform_0(%arg0: i32) -> (i32, i32, i32) {
    %c0_i32 = arith.constant 0 : i32
    %c0_i32_0 = arith.constant 0 : i32
    %c0_i32_1 = arith.constant 0 : i32
    return %arg0, %c0_i32, %c0_i32_0 : i32, i32, i32
  }
  func.func @transform_1(%arg0: i32) -> (i32, i32) {
    %c0_i32 = arith.constant 0 : i32
    %c0_i32_0 = arith.constant 0 : i32
    %c0_i32_1 = arith.constant 0 : i32
    return %c0_i32, %c0_i32_0 : i32, i32
  }
  func.func @transform_2(%arg0: i32) -> (i32, i32) {
    %c0_i32 = arith.constant 0 : i32
    %c0_i32_0 = arith.constant 0 : i32
    %c0_i32_1 = arith.constant 0 : i32
    return %c0_i32, %c0_i32_0 : i32, i32
  }
  func.func @transform_3(%arg0: i32) -> (i32, i32) {
    %c0_i32 = arith.constant 0 : i32
    %c0_i32_0 = arith.constant 0 : i32
    %c0_i32_1 = arith.constant 0 : i32
    return %c0_i32, %c0_i32_0 : i32, i32
  }
  func.func @transform_4(%arg0: i32) -> (i32, i32) {
    %c0_i32 = arith.constant 0 : i32
    %c0_i32_0 = arith.constant 0 : i32
    %c0_i32_1 = arith.constant 0 : i32
    return %c0_i32, %c0_i32_0 : i32, i32
  }
  func.func @transform_5(%arg0: i32) -> (i32, i32, i32) {
    %c0_i32 = arith.constant 0 : i32
    %c0_i32_0 = arith.constant 0 : i32
    %c0_i32_1 = arith.constant 0 : i32
    return %arg0, %c0_i32, %c0_i32_0 : i32, i32, i32
  }
}

</mosaic_0001>

<bundles_post_ra>
// kernel: forward.1
= control target key start
LH: loop header
LB: loop body
LE: loop exit
PB: predicated region body
PF: predicated region fallthrough
CT: control target
= control target key end

     0   :  { %s2713_s18 = smov 0   ;;  %s4299_s0 = inlined_call_operand.vmem [shape: f32[2,4,256], index: 0, kind: input, shape index: {}]   ;;  %s4300_s1 = inlined_call_operand.vmem [shape: f32[144,4], index: 1, kind: input, shape index: {}]   ;;  %s4301_s2 = inlined_call_operand.vmem [shape: bf16[280,256], index: 2, kind: input, shape index: {}]   ;;  %s4302_s3 = inlined_call_operand.vmem [shape: f32[16,256], index: 3, kind: input, shape index: {}]   ;;  %s4303_s4 = inlined_call_operand.vmem [shape: f32[16,256], index: 4, kind: input, shape index: {}]   ;;  %s4304_s5 = inlined_call_operand.vmem [shape: f32[2,16,256], index: 5, kind: output, shape index: {}]  }
   0x1 LB: > { %s2631_s19 = sadd.s32 4294967295, %s2680_s18   ;;  %p2635_p0 = scmp.ge.s32.totalorder %s2680_s18, 1  ;;  %s2680_s18 = sphi %s2713_s18, %s15_s18  }
   0x2   : > { %p187_p1 = scmp.lt.s32.totalorder %s2680_s18, 3 }
   0x4   : > { %p188_p2 = pnand %p2635_p0, %p187_p1 }
   0x6   : > { %191 = sbr.rel (%p188_p2) target bundleno = 693 (0x2b5), region = 40 }
   0xb   : > { %p215_p3 = scmp.lt.s32.totalorder %s2631_s19, 1  ;;  %v4309_v0 = vmov 0.0   ;;  %vm301_vm0 = vcmask 1043456   ;;  %vm246_vm1 = vcmask 31744   ;;  %v496_v1 = vld [vmem:[%s4301_s2 + $0x88] sm:$0xff]  ;;  %v497_v2 = vld [vmem:[%s4301_s2 + $0x90] sm:$0xff] }
   0xc   : > { %370 = vmatprep.mubr.f32.mxu0 %v4309_v0  ;;  %vm922_vm2 = vcmask 1041408   ;;  %v2731_v3 = vunpack.c.h.bf16 %v496_v1  ;;  %v2733_v4 = vunpack.c.h.bf16 %v497_v2  ;;  %v2735_v5 = vunpack.c.l.bf16 %v496_v1  ;;  %v495_v7 = vld [vmem:[%s4301_s2 + $0x80] sm:$0xff]  ;;  %v494_v8 = vld [vmem:[%s4301_s2 + $0x78] sm:$0xff]  ;;  %v493_v13 = vld [vmem:[%s4301_s2 + $0x70] sm:$0xff] }
   0xd   : > { %s4767_s19 = smov (!%p215_p3, %s2631_s19), 1  ;;  %v2737_v6 = vunpack.c.l.bf16 %v497_v2  ;;  %v2748_v9 = vunpack.c.h.bf16 %v495_v7  ;;  %v2750_v10 = vunpack.c.l.bf16 %v495_v7  ;;  %v2752_v11 = vunpack.c.h.bf16 %v494_v8  ;;  %v226_v23 = vld [vmem:[%s4300_s1] sm:$0xff]  ;;  %v492_v27 = vld [vmem:[%s4301_s2 + $0x68] sm:$0xff]  ;;  %v490_v50 = vld [vmem:[%s4301_s2 + $0x58] sm:$0xff] }
   0xe   : > { %s2662_s24 = sshll.u32 %s4767_s19, 3  ;;  %v2754_v12 = vunpack.c.l.bf16 %v494_v8  ;;  %v983_v15 = vrot.slane %v2731_v3, 6  ;;  %v4308_v16 = vrot.slane %v2733_v4, 6  ;;  %v981_v17 = vrot.slane %v2735_v5, 6  ;;  %v491_v40 = vld [vmem:[%s4301_s2 + $0x60] sm:$0xff]  ;;  %v227_v41 = vld [vmem:[%s4300_s1 + $0x8] sm:$0xff] }
   0xf   : > { %s219_s6 = scalar_lea.vmem %s4299_s0, %s2662_s24  ;;  %v4307_v18 = vrot.slane %v2737_v6, 6  ;;  %v979_v20 = vrot.slane %v2748_v9, 6  ;;  %v977_v21 = vrot.slane %v2750_v10, 6  ;;  %v975_v22 = vrot.slane %v2752_v11, 6  ;;  %v489_v59 = vld [vmem:[%s4301_s2 + $0x50] sm:$0xff]  ;;  %s2663_s15 = sshll.u32 %s4767_s19, 5 }
  0x10   : > { %v225_v14 = vld [vmem:[%s219_s6] sm:$0xff]  ;;  %v988_v24 = vsel %vm922_vm2, %v983_v15, %v4308_v16  ;;  %v973_v25 = vrot.slane %v2754_v12, 6  ;;  %v2773_v26 = vunpack.c.h.bf16 %v493_v13  ;;  %vm650_vm3 = vcmask 1042432   ;;  %v228_v60 = vld [vmem:[%s4300_s1 + $0x10] sm:$0xff]  ;;  %s224_s19 = scalar_lea.vmem %s4304_s5, %s2663_s15 }
  0x11   : > { %v245_v19 = vcombine.high %v225_v14, %v225_v14  ;;  %v986_v28 = vsel %vm922_vm2, %v981_v17, %v4307_v18  ;;  %v984_v29 = vsel %vm922_vm2, %v979_v20, %v983_v15  ;;  %v982_v30 = vsel %vm922_vm2, %v977_v21, %v981_v17 }
  0x12   : > { %v711_v31 = vrot.slane %v2731_v3, 5  ;;  %v980_v32 = vsel %vm922_vm2, %v975_v22, %v979_v20  ;;  %v971_v33 = vrot.slane %v2773_v26, 6  ;;  %v4306_v34 = vrot.slane %v2733_v4, 5  ;;  %v488_v20 = vld [vmem:[%s4301_s2 + $0x48] sm:$0xff] }
  0x13   : > { %2640 = vmatprep.subr.msk.mxu0 %vm301_vm0, %v245_v19  ;;  %v2789_v35 = vunpack.c.l.bf16 %v493_v13  ;;  %v709_v36 = vrot.slane %v2735_v5, 5  ;;  %v4305_v37 = vrot.slane %v2737_v6, 5  ;;  %v2794_v38 = vunpack.c.h.bf16 %v492_v27 }
  0x14   : > { %2641 = vmatpush1.msk.msra.mxu0 %vm301_vm0, %v225_v14  ;;  %v707_v39 = vrot.slane %v2748_v9, 5  ;;  %v978_v42 = vsel %vm922_vm2, %v973_v25, %v977_v21  ;;  %v716_v43 = vsel %vm650_vm3, %v711_v31, %v4306_v34  ;;  %v2809_v45 = vunpack.c.l.bf16 %v492_v27 }
  0x15   : > { %2642 = vmatmul.mubr.msk.f32.vlgmr.msra.gmra.mxu0 %vm246_vm1, %v226_v23  ;;  %1117 = vmatprep.subr.mxu0 %v988_v24  ;;  %v969_v44 = vrot.slane %v2789_v35, 6  ;;  %v976_v46 = vsel %vm922_vm2, %v971_v33, %v975_v22  ;;  %v714_v47 = vsel %vm650_vm3, %v709_v36, %v4305_v37  ;;  %v967_v48 = vrot.slane %v2794_v38, 6 }
  0x16   : > { %376 = vmatprep.mubr.f32.mxu0 %v4309_v0  ;;  %1118 = vmatpush1.msra.mxu0 %v986_v28  ;;  %4492 = vst [vmem:[#allocation2_spill] sm:$0xff] %v2809_v45  ;;  %v705_v49 = vrot.slane %v2750_v10, 5  ;;  %v712_v51 = vsel %vm650_vm3, %v707_v39, %v711_v31  ;;  %v965_v52 = vrot.slane %v2809_v45, 6  ;;  %v2822_v53 = vunpack.c.h.bf16 %v491_v40  ;;  %v487_v31 = vld [vmem:[%s4301_s2 + $0x40] sm:$0xff] }
  0x17   : > { %1119 = vmatprep.subr.mxu0 %v984_v29  ;;  %845 = vmatprep.subr.mxu1 %v716_v43  ;;  %v703_v54 = vrot.slane %v2752_v11, 5  ;;  %v974_v55 = vsel %vm922_vm2, %v969_v44, %v973_v25  ;;  %v2828_v57 = vunpack.c.l.bf16 %v491_v40  ;;  %v701_v58 = vrot.slane %v2754_v12, 5  ;;  %v229_v25 = vld [vmem:[%s4300_s1 + $0x18] sm:$0xff] }
  0x18   : > { %1120 = vmatpush1.msra.mxu0 %v982_v30  ;;  %846 = vmatpush1.msra.mxu1 %v714_v47  ;;  %4493 = vst [vmem:[#allocation3_spill] sm:$0xff] %v2822_v53  ;;  %v710_v56 = vsel %vm650_vm3, %v705_v49, %v709_v36  ;;  %v972_v61 = vsel %vm922_vm2, %v967_v48, %v971_v33  ;;  %v963_v63 = vrot.slane %v2822_v53, 6  ;;  %v2841_v1 = vunpack.c.h.bf16 %v490_v50 }
  0x19   : > { %2643 = vmatmul.mubr.msk.f32.gmra.mxu0 %vm246_vm1, %v227_v41  ;;  %1121 = vmatprep.subr.mxu0 %v980_v32  ;;  %4494 = vst [vmem:[#allocation4_spill] sm:$0xff] %v2828_v57  ;;  %v970_v62 = vsel %vm922_vm2, %v965_v52, %v969_v44  ;;  %v708_v2 = vsel %vm650_vm3, %v703_v54, %v707_v39  ;;  %v961_v7 = vrot.slane %v2828_v57, 6  ;;  %v699_v8 = vrot.slane %v2773_v26, 5 }
  0x1a   : > { %382 = vmatprep.mubr.f32.mxu0 %v4309_v0  ;;  %1122 = vmatpush1.msra.mxu0 %v978_v42  ;;  %4495 = vst [vmem:[#allocation5_spill] sm:$0xff] %v2841_v1  ;;  %v2846_v13 = vunpack.c.l.bf16 %v490_v50  ;;  %v968_v14 = vsel %vm922_vm2, %v963_v63, %v967_v48  ;;  %v959_v15 = vrot.slane %v2841_v1, 6  ;;  %v697_v17 = vrot.slane %v2789_v35, 5  ;;  %v230_v50 = vld [vmem:[%s4300_s1 + $0x20] sm:$0xff] }
  0x1b   : > { %1123 = vmatprep.subr.mxu0 %v976_v46  ;;  %847 = vmatprep.subr.mxu1 %v712_v51  ;;  %v2851_v19 = vunpack.c.h.bf16 %v489_v59  ;;  %v966_v21 = vsel %vm922_vm2, %v961_v7, %v965_v52  ;;  %v706_v22 = vsel %vm650_vm3, %v701_v58, %v705_v49  ;;  %v695_v24 = vrot.slane %v2794_v38, 5  ;;  %v486_v49 = vld [vmem:[%s4301_s2 + $0x38] sm:$0xff] }
  0x1c   : > { %4496 = vst [vmem:[#allocation6_spill] sm:$0xff] %v2846_v13  ;;  %1124 = vmatpush1.msra.mxu0 %v974_v55  ;;  %848 = vmatpush1.msra.mxu1 %v710_v56  ;;  %v957_v23 = vrot.slane %v2846_v13, 6  ;;  %v964_v27 = vsel %vm922_vm2, %v959_v15, %v963_v63  ;;  %v704_v28 = vsel %vm650_vm3, %v699_v8, %v703_v54  ;;  %v2868_v30 = vunpack.c.l.bf16 %v489_v59 }
  0x1d   : > { %4497 = vst [vmem:[#allocation7_spill] sm:$0xff] %v2851_v19  ;;  %2644 = vmatmul.mubr.msk.f32.gmra.mxu0 %vm246_vm1, %v228_v60  ;;  %1125 = vmatprep.subr.mxu0 %v972_v61  ;;  %v955_v29 = vrot.slane %v2851_v19, 6  ;;  %v702_v33 = vsel %vm650_vm3, %v697_v17, %v701_v58  ;;  %v693_v36 = vrot.slane %v2809_v45, 5  ;;  %v2876_v39 = vunpack.c.h.bf16 %v488_v20  ;;  %v485_v60 = vld [vmem:[%s4301_s2 + $0x30] sm:$0xff] }
  0x1e   : > { %388 = vmatprep.mubr.f32.mxu0 %v4309_v0  ;;  %1126 = vmatpush1.msra.mxu0 %v970_v62  ;;  %4498 = vst [vmem:[#allocation8_spill] sm:$0xff] %v2868_v30  ;;  %v962_v32 = vsel %vm922_vm2, %v957_v23, %v961_v7  ;;  %v700_v40 = vsel %vm650_vm3, %v695_v24, %v699_v8  ;;  %v953_v41 = vrot.slane %v2868_v30, 6  ;;  %v691_v42 = vrot.slane %v2822_v53, 5 }
  0x1f   : > { %1127 = vmatprep.subr.mxu0 %v968_v14  ;;  %849 = vmatprep.subr.mxu1 %v708_v2  ;;  %4499 = vst [vmem:[#allocation9_spill] sm:$0xff] %v2876_v39  ;;  %v2881_v43 = vunpack.c.l.bf16 %v488_v20  ;;  %v960_v44 = vsel %vm922_vm2, %v955_v29, %v959_v15  ;;  %v951_v46 = vrot.slane %v2876_v39, 6  ;;  %v689_v47 = vrot.slane %v2828_v57, 5 }
  0x20   : > { %1128 = vmatpush1.msra.mxu0 %v966_v21  ;;  %850 = vmatpush1.msra.mxu1 %v706_v22  ;;  %v2887_v48 = vunpack.c.h.bf16 %v487_v31  ;;  %v958_v51 = vsel %vm922_vm2, %v953_v41, %v957_v23  ;;  %v698_v52 = vsel %vm650_vm3, %v693_v36, %v697_v17  ;;  %v696_v55 = vsel %vm650_vm3, %v691_v42, %v695_v24  ;;  %v231_v17 = vld [vmem:[%s4300_s1 + $0x28] sm:$0xff] }
  0x21   : > { %4500 = vst [vmem:[#allocation10_spill] sm:$0xff] %v2881_v43  ;;  %2645 = vmatmul.mubr.msk.f32.gmra.mxu0 %vm246_vm1, %v229_v25  ;;  %1129 = vmatprep.subr.mxu0 %v964_v27  ;;  %v949_v54 = vrot.slane %v2881_v43, 6  ;;  %v687_v58 = vrot.slane %v2841_v1, 5  ;;  %v2902_v59 = vunpack.c.l.bf16 %v487_v31  ;;  %v956_v61 = vsel %vm922_vm2, %v951_v46, %v955_v29  ;;  %v484_v24 = vld [vmem:[%s4301_s2 + $0x28] sm:$0xff] }
  0x22   : > { %4501 = vst [vmem:[#allocation11_spill] sm:$0xff] %v2887_v48  ;;  %394 = vmatprep.mubr.f32.mxu0 %v4309_v0  ;;  %851 = vmatprep.subr.mxu1 %v704_v28  ;;  %v947_v56 = vrot.slane %v2887_v48, 6  ;;  %v694_v62 = vsel %vm650_vm3, %v689_v47, %v693_v36  ;;  %v685_v63 = vrot.slane %v2846_v13, 5  ;;  %v2910_v2 = vunpack.c.h.bf16 %v486_v49 }
  0x23   : > { %1130 = vmatpush1.msra.mxu0 %v962_v32  ;;  %852 = vmatpush1.msra.mxu1 %v702_v33  ;;  %4502 = vst [vmem:[#allocation12_spill] sm:$0xff] %v2902_v59  ;;  %v954_v7 = vsel %vm922_vm2, %v949_v54, %v953_v41  ;;  %v945_v8 = vrot.slane %v2902_v59, 6  ;;  %v683_v14 = vrot.slane %v2851_v19, 5  ;;  %v2916_v15 = vunpack.c.l.bf16 %v486_v49 }
  0x24   : > { %1131 = vmatprep.subr.mxu0 %v960_v44  ;;  %853 = vmatprep.subr.mxu1 %v700_v40  ;;  %4503 = vst [vmem:[#allocation13_spill] sm:$0xff] %v2910_v2  ;;  %v952_v20 = vsel %vm922_vm2, %v947_v56, %v951_v46  ;;  %v943_v21 = vrot.slane %v2910_v2, 6  ;;  %v681_v22 = vrot.slane %v2868_v30, 5  ;;  %v2925_v23 = vunpack.c.h.bf16 %v485_v60  ;;  %v483_v40 = vld [vmem:[%s4301_s2 + $0x20] sm:$0xff] }
  0x25   : > { %2646 = vmatmul.mubr.msk.f32.gmra.mxu0 %vm246_vm1, %v230_v50  ;;  %854 = vmatpush1.msra.mxu1 %v698_v52  ;;  %4504 = vst [vmem:[#allocation14_spill] sm:$0xff] %v2916_v15  ;;  %v692_v25 = vsel %vm650_vm3, %v687_v58, %v691_v42  ;;  %v690_v27 = vsel %vm650_vm3, %v685_v63, %v689_v47  ;;  %v941_v28 = vrot.slane %v2916_v15, 6  ;;  %v679_v29 = vrot.slane %v2876_v39, 5  ;;  %v232_v47 = vld [vmem:[%s4300_s1 + $0x30] sm:$0xff] }
  0x26   : > { %400 = vmatprep.mubr.f32.mxu0 %v4309_v0  ;;  %1132 = vmatpush1.msra.mxu0 %v958_v51  ;;  %4505 = vst [vmem:[#allocation15_spill] sm:$0xff] %v2925_v23  ;;  %v950_v31 = vsel %vm922_vm2, %v945_v8, %v949_v54  ;;  %v688_v32 = vsel %vm650_vm3, %v683_v14, %v687_v58  ;;  %v939_v33 = vrot.slane %v2925_v23, 6  ;;  %v2937_v36 = vunpack.c.l.bf16 %v485_v60  ;;  %v482_v60 = vld [vmem:[%s4301_s2 + $0x18] sm:$0xff] }
  0x27   : > { %1133 = vmatprep.subr.mxu0 %v956_v61  ;;  %855 = vmatprep.subr.mxu1 %v696_v55  ;;  %v948_v41 = vsel %vm922_vm2, %v943_v21, %v947_v56  ;;  %v686_v42 = vsel %vm650_vm3, %v681_v22, %v685_v63  ;;  %v677_v44 = vrot.slane %v2881_v43, 5  ;;  %v2946_v46 = vunpack.c.h.bf16 %v484_v24 }
  0x28   : > { %1134 = vmatpush1.msra.mxu0 %v954_v7  ;;  %856 = vmatpush1.msra.mxu1 %v694_v62  ;;  %4506 = vst [vmem:[#allocation16_spill] sm:$0xff] %v2937_v36  ;;  %v946_v49 = vsel %vm922_vm2, %v941_v28, %v945_v8  ;;  %v937_v50 = vrot.slane %v2937_v36, 6  ;;  %v675_v51 = vrot.slane %v2887_v48, 5  ;;  %v2955_v52 = vunpack.c.l.bf16 %v484_v24 }
  0x29   : > { %2647 = vmatmul.mubr.msk.f32.gmra.mxu0 %vm246_vm1, %v231_v17  ;;  %1135 = vmatprep.subr.mxu0 %v952_v20  ;;  %4507 = vst [vmem:[#allocation17_spill] sm:$0xff] %v2946_v46  ;;  %v684_v54 = vsel %vm650_vm3, %v679_v29, %v683_v14  ;;  %v935_v55 = vrot.slane %v2946_v46, 6  ;;  %v673_v56 = vrot.slane %v2902_v59, 5  ;;  %v2960_v58 = vunpack.c.h.bf16 %v483_v40 }
  0x2a   : > { %406 = vmatprep.mubr.f32.mxu0 %v4309_v0  ;;  %857 = vmatprep.subr.mxu1 %v692_v25  ;;  %4508 = vst [vmem:[#allocation18_spill] sm:$0xff] %v2955_v52  ;;  %v944_v61 = vsel %vm922_vm2, %v939_v33, %v943_v21  ;;  %v682_v62 = vsel %vm650_vm3, %v677_v44, %v681_v22  ;;  %v933_v63 = vrot.slane %v2955_v52, 6  ;;  %v671_v7 = vrot.slane %v2910_v2, 5  ;;  %v481_v21 = vld [vmem:[%s4301_s2 + $0x10] sm:$0xff]  ;;  %v233_v22 = vld [vmem:[%s4300_s1 + $0x38] sm:$0xff] }
  0x2b   : > { %1136 = vmatpush1.msra.mxu0 %v950_v31  ;;  %858 = vmatpush1.msra.mxu1 %v690_v27  ;;  %4509 = vst [vmem:[#allocation19_spill] sm:$0xff] %v2960_v58  ;;  %v942_v8 = vsel %vm922_vm2, %v937_v50, %v941_v28  ;;  %v680_v14 = vsel %vm650_vm3, %v675_v51, %v679_v29  ;;  %v931_v17 = vrot.slane %v2960_v58, 6  ;;  %v2973_v20 = vunpack.c.l.bf16 %v483_v40 }
  0x2c   : > { %1137 = vmatprep.subr.mxu0 %v948_v41  ;;  %859 = vmatprep.subr.mxu1 %v688_v32  ;;  %v940_v24 = vsel %vm922_vm2, %v935_v55, %v939_v33  ;;  %v678_v25 = vsel %vm650_vm3, %v673_v56, %v677_v44  ;;  %v669_v27 = vrot.slane %v2916_v15, 5  ;;  %v2985_v28 = vunpack.c.h.bf16 %v482_v60 }
  0x2d   : > { %2648 = vmatmul.mubr.msk.f32.gmra.mxu0 %vm246_vm1, %v232_v47  ;;  %860 = vmatpush1.msra.mxu1 %v686_v42  ;;  %4510 = vst [vmem:[#allocation20_spill] sm:$0xff] %v2973_v20  ;;  %v938_v29 = vsel %vm922_vm2, %v933_v63, %v937_v50  ;;  %v929_v31 = vrot.slane %v2973_v20, 6  ;;  %v667_v32 = vrot.slane %v2925_v23, 5  ;;  %v2990_v40 = vunpack.c.l.bf16 %v482_v60  ;;  %v512_v47 = vld [vmem:[%s4301_s2 + $0x108] sm:$0xff]  ;;  %v513_v60 = vld [vmem:[%s4301_s2 + $0x110] sm:$0xff] }
  0x2e   : > { %412 = vmatprep.mubr.f32.mxu0 %v4309_v0  ;;  %1138 = vmatpush1.msra.mxu0 %v946_v49  ;;  %4511 = vst [vmem:[#allocation21_spill] sm:$0xff] %v2985_v28  ;;  %v676_v33 = vsel %vm650_vm3, %v671_v7, %v675_v51  ;;  %v927_v41 = vrot.slane %v2985_v28, 6  ;;  %v665_v42 = vrot.slane %v2937_v36, 5  ;;  %v2995_v44 = vunpack.c.h.bf16 %v481_v21 }
  0x2f   : > { %1139 = vmatprep.subr.mxu0 %v944_v61  ;;  %861 = vmatprep.subr.mxu1 %v684_v54  ;;  %4512 = vst [vmem:[#allocation22_spill] sm:$0xff] %v2990_v40  ;;  %v936_v49 = vsel %vm922_vm2, %v931_v17, %v935_v55  ;;  %v674_v50 = vsel %vm650_vm3, %v669_v27, %v673_v56  ;;  %v924_v54 = vrot.slane %v2990_v40, 6  ;;  %v663_v51 = vrot.slane %v2946_v46, 5  ;;  %v234_v61 = vld [vmem:[%s4300_s1 + $0x40] sm:$0xff] }
  0x30   : > { %1140 = vmatpush1.msra.mxu0 %v942_v8  ;;  %862 = vmatpush1.msra.mxu1 %v682_v62  ;;  %4513 = vst [vmem:[#allocation23_spill] sm:$0xff] %v2995_v44  ;;  %v934_v62 = vsel %vm922_vm2, %v929_v31, %v933_v63  ;;  %v672_v55 = vsel %vm650_vm3, %v667_v32, %v671_v7  ;;  %v926_v56 = vrot.slane %v2995_v44, 6  ;;  %v3015_v8 = vunpack.c.l.bf16 %v481_v21 }
  0x31   : > { %2649 = vmatmul.mubr.msk.f32.gmra.mxu0 %vm246_vm1, %v233_v22  ;;  %1141 = vmatprep.subr.mxu0 %v940_v24  ;;  %v932_v22 = vsel %vm922_vm2, %v927_v41, %v931_v17  ;;  %v670_v24 = vsel %vm650_vm3, %v665_v42, %v669_v27  ;;  %v661_v37 = vrot.slane %v2955_v52, 5  ;;  %v3020_v34 = vunpack.c.h.bf16 %v512_v47  ;;  %v511_v17 = vld [vmem:[%s4301_s2 + $0x100] sm:$0xff] }
  0x32   : > { %418 = vmatprep.mubr.f32.mxu0 %v4309_v0  ;;  %863 = vmatprep.subr.mxu1 %v680_v14  ;;  %4514 = vst [vmem:[#allocation24_spill] sm:$0xff] %v3015_v8  ;;  %v930_v63 = vsel %vm922_vm2, %v924_v54, %v929_v31  ;;  %v923_v7 = vrot.slane %v3015_v8, 6  ;;  %v3024_v14 = vunpack.c.h.bf16 %v513_v60  ;;  %v659_v21 = vrot.slane %v2960_v58, 5 }
  0x33   : > { %1142 = vmatpush1.msra.mxu0 %v938_v29  ;;  %864 = vmatpush1.msra.mxu1 %v678_v25  ;;  %4515 = vst [vmem:[#allocation25_spill] sm:$0xff] %v3020_v34  ;;  %v668_v25 = vsel %vm650_vm3, %v663_v51, %v667_v32  ;;  %v1047_v27 = vrot.slane %v3020_v34, 6  ;;  %v3033_v29 = vunpack.c.l.bf16 %v512_v47  ;;  %v3035_v31 = vunpack.c.l.bf16 %v513_v60  ;;  %v510_v47 = vld [vmem:[%s4301_s2 + $0xf8] sm:$0xff] }
  0x34   : > { %1143 = vmatprep.subr.mxu0 %v936_v49  ;;  %865 = vmatprep.subr.mxu1 %v676_v33  ;;  %4516 = vst [vmem:[#allocation26_spill] sm:$0xff] %v3024_v14  ;;  %v235_v33 = vld [vmem:[%s4300_s1 + $0x48] sm:$0xff]  ;;  %v928_v49 = vsel %vm922_vm2, %v926_v56, %v927_v41  ;;  %v657_v32 = vrot.slane %v2973_v20, 5  ;;  %v3050_v16 = vunpack.c.h.bf16 %v511_v17  ;;  %v655_v41 = vrot.slane %v2985_v28, 5 }
  0x35   : > { %2650 = vmatmul.mubr.msk.f32.gmra.mxu0 %vm246_vm1, %v234_v61  ;;  %866 = vmatpush1.msra.mxu1 %v674_v50  ;;  %4517 = vst [vmem:[#allocation27_spill] sm:$0xff] %v3033_v29  ;;  %4518 = vst [vmem:[#allocation28_spill] sm:$0xff] %v3035_v31  ;;  %v666_v61 = vsel %vm650_vm3, %v661_v37, %v665_v42  ;;  %v1051_v50 = vrot.slane %v3024_v14, 6  ;;  %v1045_v60 = vrot.slane %v3033_v29, 6  ;;  %v1049_v18 = vrot.slane %v3035_v31, 6 }
  0x36   : > { %424 = vmatprep.mubr.f32.mxu0 %v4309_v0  ;;  %1144 = vmatpush1.msra.mxu0 %v934_v62  ;;  %4519 = vst [vmem:[#allocation29_spill] sm:$0xff] %v3050_v16  ;;  %v925_v42 = vsel %vm922_vm2, %v923_v7, %v924_v54  ;;  %v664_v62 = vsel %vm650_vm3, %v659_v21, %v663_v51  ;;  %v3055_v56 = vunpack.c.l.bf16 %v511_v17  ;;  %v652_v0 = vrot.slane %v2990_v40, 5  ;;  %v236_v7 = vld [vmem:[%s4300_s1 + $0x50] sm:$0xff] }
  0x37   : > { %1145 = vmatprep.subr.mxu0 %v932_v22  ;;  %867 = vmatprep.subr.mxu1 %v672_v55  ;;  %v509_v55 = vld [vmem:[%s4301_s2 + $0xf0] sm:$0xff]  ;;  %v1052_v22 = vsel %vm922_vm2, %v1047_v27, %v1051_v50  ;;  %v3065_v54 = vunpack.c.h.bf16 %v510_v47  ;;  %v4522_v51 = vmov 0.0   ;;  %v1050_v17 = vsel %vm922_vm2, %v1045_v60, %v1049_v18 }
  0x38   : > { %1146 = vmatpush1.msra.mxu0 %v930_v63  ;;  %868 = vmatpush1.msra.mxu1 %v670_v24  ;;  %4520 = vst [vmem:[#allocation30_spill] sm:$0xff] %v3055_v56  ;;  %v662_v63 = vsel %vm650_vm3, %v657_v32, %v661_v37  ;;  %v1043_v24 = vrot.slane %v3050_v16, 6  ;;  %v3074_v50 = vunpack.c.l.bf16 %v510_v47  ;;  %v660_v37 = vsel %vm650_vm3, %v655_v41, %v659_v21  ;;  %v508_v21 = vld [vmem:[%s4301_s2 + $0xe8] sm:$0xff] }
  0x39   : > { %2651 = vmatmul.mubr.msk.f32.gmra.mxu0 %vm246_vm1, %v235_v33  ;;  %1147 = vmatprep.subr.mxu0 %v928_v49  ;;  %4521 = vst [vmem:[#allocation31_spill] sm:$0xff] %v3065_v54  ;;  %v1041_v33 = vrot.slane %v3055_v56, 6  ;;  %v654_v49 = vrot.slane %v2995_v44, 5  ;;  %v1039_v40 = vrot.slane %v3065_v54, 6  ;;  %v651_v28 = vrot.slane %v3015_v8, 5 }
  0x3a   : > { %430 = vmatprep.mubr.f32.mxu0 %v4522_v51  ;;  %869 = vmatprep.subr.mxu1 %v668_v25  ;;  %4523 = vst [vmem:[#allocation32_spill] sm:$0xff] %v3074_v50  ;;  %v3079_v20 = vunpack.c.h.bf16 %v509_v55  ;;  %v1048_v18 = vsel %vm922_vm2, %v1043_v24, %v1047_v27  ;;  %v658_v44 = vsel %vm650_vm3, %v652_v0, %v657_v32  ;;  %v1037_v47 = vrot.slane %v3074_v50, 6  ;;  %v237_v32 = vld [vmem:[%s4300_s1 + $0x58] sm:$0xff] }
  0x3b   : > { %1148 = vmatpush1.msra.mxu0 %v925_v42  ;;  %870 = vmatpush1.msra.mxu1 %v666_v61  ;;  %v1046_v25 = vsel %vm922_vm2, %v1041_v33, %v1045_v60  ;;  %v656_v61 = vsel %vm650_vm3, %v654_v49, %v655_v41  ;;  %v779_v27 = vrot.slane %v3024_v14, 5  ;;  %v1044_v60 = vsel %vm922_vm2, %v1039_v40, %v1043_v24 }
  0x3c   : > { %4524 = vst [vmem:[#allocation33_spill] sm:$0xff] %v3079_v20  ;;  %1149 = vmatprep.subr.mxu0 %v1052_v22  ;;  %871 = vmatprep.subr.mxu1 %v664_v62  ;;  %v1035_v42 = vrot.slane %v3079_v20, 6  ;;  %v775_v62 = vrot.slane %v3020_v34, 5  ;;  %v3098_v22 = vunpack.c.l.bf16 %v509_v55  ;;  %v777_v41 = vrot.slane %v3035_v31, 5 }
  0x3d   : > { %2652 = vmatmul.mubr.msk.f32.gmra.mxu0 %vm246_vm1, %v236_v7  ;;  %872 = vmatpush1.msra.mxu1 %v662_v63  ;;  %v773_v63 = vrot.slane %v3033_v29, 5  ;;  %v507_v7 = vld [vmem:[%s4301_s2 + $0xe0] sm:$0xff]  ;;  %v1042_v49 = vsel %vm922_vm2, %v1037_v47, %v1041_v33  ;;  %v653_v14 = vsel %vm650_vm3, %v651_v28, %v652_v0  ;;  %v3107_v34 = vunpack.c.h.bf16 %v508_v21 }
  0x3e   : > { %436 = vmatprep.mubr.f32.mxu0 %v4522_v51  ;;  %1150 = vmatpush2.msra.mxu0 %v1050_v17  ;;  %4525 = vst [vmem:[#allocation34_spill] sm:$0xff] %v3098_v22  ;;  %v771_v24 = vrot.slane %v3050_v16, 5  ;;  %v1040_v55 = vsel %vm922_vm2, %v1035_v42, %v1039_v40  ;;  %v1033_v17 = vrot.slane %v3098_v22, 6  ;;  %v3112_v31 = vunpack.c.l.bf16 %v508_v21  ;;  %v506_v40 = vld [vmem:[%s4301_s2 + $0xd8] sm:$0xff] }
  0x3f   : > { %1151 = vmatprep.subr.mxu0 %v1048_v18  ;;  %873 = vmatprep.subr.mxu1 %v660_v37  ;;  %4526 = vst [vmem:[#allocation35_spill] sm:$0xff] %v3107_v34  ;;  %v769_v29 = vrot.slane %v3055_v56, 5  ;;  %v780_v33 = vsel %vm650_vm3, %v775_v62, %v779_v27  ;;  %v778_v0 = vsel %vm650_vm3, %v773_v63, %v777_v41  ;;  %v1031_v28 = vrot.slane %v3107_v34, 6  ;;  %v238_v27 = vld [vmem:[%s4300_s1 + $0x60] sm:$0xff]  ;;  %v505_v41 = vld [vmem:[%s4301_s2 + $0xd0] sm:$0xff] }
  0x40   : > { %1152 = vmatpush2.msra.mxu0 %v1046_v25  ;;  %874 = vmatpush1.msra.mxu1 %v658_v44  ;;  %4527 = vst [vmem:[#allocation36_spill] sm:$0xff] %v3112_v31  ;;  %v3119_v37 = vunpack.c.h.bf16 %v507_v7  ;;  %v1038_v44 = vsel %vm922_vm2, %v1033_v17, %v1037_v47  ;;  %v1029_v18 = vrot.slane %v3112_v31, 6  ;;  %v767_v25 = vrot.slane %v3065_v54, 5 }
  0x41   : > { %2653 = vmatmul.mubr.msk.f32.gmra.mxu0 %vm246_vm1, %v237_v32  ;;  %1153 = vmatprep.subr.mxu0 %v1044_v60  ;;  %v3127_v21 = vunpack.c.l.bf16 %v507_v7  ;;  %v1036_v32 = vsel %vm922_vm2, %v1031_v28, %v1035_v42  ;;  %v776_v60 = vsel %vm650_vm3, %v771_v24, %v775_v62  ;;  %v765_v47 = vrot.slane %v3074_v50, 5 }
  0x42   : > { %4528 = vst [vmem:[#allocation37_spill] sm:$0xff] %v3119_v37  ;;  %875 = vmatprep.subr.mxu1 %v656_v61  ;;  %1154 = vmatpush2.msra.mxu0 %v1042_v49  ;;  %v1027_v61 = vrot.slane %v3119_v37, 6  ;;  %v774_v7 = vsel %vm650_vm3, %v769_v29, %v773_v63  ;;  %v3143_v42 = vunpack.c.h.bf16 %v506_v40  ;;  %v3147_v50 = vunpack.c.l.bf16 %v506_v40 }
  0x43   : > { %4529 = vst [vmem:[#allocation38_spill] sm:$0xff] %v3127_v21  ;;  %876 = vmatpush1.msra.mxu1 %v653_v14  ;;  %1155 = vmatprep.subr.mxu0 %v1040_v55  ;;  %v1034_v14 = vsel %vm922_vm2, %v1029_v18, %v1033_v17  ;;  %v1025_v49 = vrot.slane %v3127_v21, 6  ;;  %v763_v55 = vrot.slane %v3079_v20, 5  ;;  %v761_v54 = vrot.slane %v3098_v22, 5  ;;  %v504_v17 = vld [vmem:[%s4301_s2 + $0xc8] sm:$0xff] }
  0x44   : > { %442 = vmatprep.mubr.f32.mxu0 %v4522_v51  ;;  %877 = vmatprep.subr.mxu1 %v780_v33  ;;  %4530 = vst [vmem:[#allocation39_spill] sm:$0xff] %v3143_v42  ;;  %v1032_v62 = vsel %vm922_vm2, %v1027_v61, %v1031_v28  ;;  %4531 = vst [vmem:[#allocation40_spill] sm:$0xff] %v3147_v50  ;;  %v772_v63 = vsel %vm650_vm3, %v767_v25, %v771_v24  ;;  %v3157_v28 = vunpack.c.h.bf16 %v505_v41  ;;  %vm1834_vm4 = vcmask 1045504  }
  0x45   : > { %1156 = vmatpush2.msra.mxu0 %v1038_v44  ;;  %878 = vmatpush2.msra.mxu1 %v778_v0  ;;  %v770_v33 = vsel %vm650_vm3, %v765_v47, %v769_v29  ;;  %v1023_v0 = vrot.slane %v3143_v42, 6  ;;  %v1030_v40 = vsel %vm922_vm2, %v1025_v49, %v1029_v18  ;;  %v1021_v44 = vrot.slane %v3147_v50, 6  ;;  %v239_v29 = vld [vmem:[%s4300_s1 + $0x68] sm:$0xff]  ;;  %v503_v18 = vld [vmem:[%s4301_s2 + $0xc0] sm:$0xff] }
  0x46   : > { %2654 = vmatmul.mubr.msk.f32.gmra.mxu0 %vm246_vm1, %v238_v27  ;;  %1157 = vmatprep.subr.mxu0 %v1036_v32  ;;  %4532 = vst [vmem:[#allocation41_spill] sm:$0xff] %v3157_v28  ;;  %v759_v22 = vrot.slane %v3107_v34, 5  ;;  %v3162_v20 = vunpack.c.l.bf16 %v505_v41  ;;  %v1019_v27 = vrot.slane %v3157_v28, 6  ;;  %v757_v32 = vrot.slane %v3112_v31, 5 }
  0x47   : > { %879 = vmatprep.subr.mxu1 %v776_v60  ;;  %1158 = vmatpush2.msra.mxu0 %v1034_v14  ;;  %v1028_v24 = vsel %vm922_vm2, %v1023_v0, %v1027_v61  ;;  %v3170_v60 = vunpack.c.h.bf16 %v504_v17  ;;  %v768_v41 = vsel %vm650_vm3, %v763_v55, %v767_v25  ;;  %v1026_v14 = vsel %vm922_vm2, %v1021_v44, %v1025_v49  ;;  %v502_v25 = vld [vmem:[%s4301_s2 + $0xb8] sm:$0xff] }
  0x48   : > { %4533 = vst [vmem:[#allocation42_spill] sm:$0xff] %v3162_v20  ;;  %880 = vmatpush2.msra.mxu1 %v774_v7  ;;  %1159 = vmatprep.subr.mxu0 %v1032_v62  ;;  %v766_v7 = vsel %vm650_vm3, %v761_v54, %v765_v47  ;;  %v1017_v61 = vrot.slane %v3162_v20, 6  ;;  %v1024_v62 = vsel %vm922_vm2, %v1019_v27, %v1023_v0  ;;  %v755_v34 = vrot.slane %v3119_v37, 5 }
  0x49   : > { %4534 = vst [vmem:[#allocation43_spill] sm:$0xff] %v3170_v60  ;;  %448 = vmatprep.mubr.f32.mxu0 %v4522_v51  ;;  %881 = vmatprep.subr.mxu1 %v772_v63  ;;  %v1015_v31 = vrot.slane %v3170_v60, 6  ;;  %v3183_v56 = vunpack.c.l.bf16 %v504_v17  ;;  %v764_v47 = vsel %vm650_vm3, %v759_v22, %v763_v55  ;;  %v762_v49 = vsel %vm650_vm3, %v757_v32, %v761_v54  ;;  %v240_v54 = vld [vmem:[%s4300_s1 + $0x70] sm:$0xff] }
  0x4a   : > { %1160 = vmatpush2.msra.mxu0 %v1030_v40  ;;  %882 = vmatpush2.msra.mxu1 %v770_v33  ;;  %v753_v63 = vrot.slane %v3127_v21, 5  ;;  %v3192_v33 = vunpack.c.h.bf16 %v503_v18  ;;  %v1022_v17 = vsel %vm922_vm2, %v1017_v61, %v1021_v44  ;;  %v751_v40 = vrot.slane %v3143_v42, 5  ;;  %v501_v44 = vld [vmem:[%s4301_s2 + $0xb0] sm:$0xff] }
  0x4b   : > { %4535 = vst [vmem:[#allocation44_spill] sm:$0xff] %v3183_v56  ;;  %2655 = vmatmul.mubr.msk.f32.gmra.mxu0 %vm246_vm1, %v239_v29  ;;  %1161 = vmatprep.subr.mxu0 %v1028_v24  ;;  %v1013_v0 = vrot.slane %v3183_v56, 6  ;;  %v3197_v37 = vunpack.c.l.bf16 %v503_v18  ;;  %v1020_v55 = vsel %vm922_vm2, %v1015_v31, %v1019_v27  ;;  %v749_v24 = vrot.slane %v3147_v50, 5 }
  0x4c   : > { %4536 = vst [vmem:[#allocation45_spill] sm:$0xff] %v3192_v33  ;;  %883 = vmatprep.subr.mxu1 %v768_v41  ;;  %1162 = vmatpush2.msra.mxu0 %v1026_v14  ;;  %v1011_v29 = vrot.slane %v3192_v33, 6  ;;  %v3205_v41 = vunpack.c.h.bf16 %v502_v25  ;;  %v760_v18 = vsel %vm650_vm3, %v755_v34, %v759_v22  ;;  %v747_v42 = vrot.slane %v3157_v28, 5  ;;  %v500_v22 = vld [vmem:[%s4301_s2 + $0xa8] sm:$0xff] }
  0x4d   : > { %4537 = vst [vmem:[#allocation46_spill] sm:$0xff] %v3197_v37  ;;  %884 = vmatpush2.msra.mxu1 %v766_v7  ;;  %1163 = vmatprep.subr.mxu0 %v1024_v62  ;;  %v1018_v14 = vsel %vm922_vm2, %v1013_v0, %v1017_v61  ;;  %v758_v7 = vsel %vm650_vm3, %v753_v63, %v757_v32  ;;  %v1009_v27 = vrot.slane %v3197_v37, 6  ;;  %v3218_v21 = vunpack.c.l.bf16 %v502_v25 }
  0x4e   : > { %4538 = vst [vmem:[#allocation47_spill] sm:$0xff] %v3205_v41  ;;  %454 = vmatprep.mubr.f32.mxu0 %v4522_v51  ;;  %885 = vmatprep.subr.mxu1 %v764_v47  ;;  %v1016_v62 = vsel %vm922_vm2, %v1011_v29, %v1015_v31  ;;  %v1007_v50 = vrot.slane %v3205_v41, 6  ;;  %v756_v32 = vsel %vm650_vm3, %v751_v40, %v755_v34  ;;  %v745_v47 = vrot.slane %v3162_v20, 5  ;;  %v241_v34 = vld [vmem:[%s4300_s1 + $0x78] sm:$0xff] }
  0x4f   : > { %1164 = vmatpush2.msra.mxu0 %v1022_v17  ;;  %886 = vmatpush2.msra.mxu1 %v762_v49  ;;  %4539 = vst [vmem:[#allocation48_spill] sm:$0xff] %v3218_v21  ;;  %v754_v61 = vsel %vm650_vm3, %v749_v24, %v753_v63  ;;  %v3227_v31 = vunpack.c.h.bf16 %v501_v44  ;;  %v1014_v25 = vsel %vm922_vm2, %v1009_v27, %v1013_v0  ;;  %v1005_v49 = vrot.slane %v3218_v21, 6  ;;  %v499_v0 = vld [vmem:[%s4301_s2 + $0xa0] sm:$0xff] }
  0x50   : > { %2656 = vmatmul.mubr.msk.f32.gmra.mxu0 %vm246_vm1, %v240_v54  ;;  %1165 = vmatprep.subr.mxu0 %v1020_v55  ;;  %v743_v17 = vrot.slane %v3170_v60, 5  ;;  %v3232_v28 = vunpack.c.l.bf16 %v501_v44  ;;  %v1012_v63 = vsel %vm922_vm2, %v1007_v50, %v1011_v29  ;;  %v741_v55 = vrot.slane %v3183_v56, 5 }
  0x51   : > { %4540 = vst [vmem:[#allocation49_spill] sm:$0xff] %v3227_v31  ;;  %887 = vmatprep.subr.mxu1 %v760_v18  ;;  %1166 = vmatpush2.msra.mxu0 %v1018_v14  ;;  %v1003_v54 = vrot.slane %v3227_v31, 6  ;;  %v3240_v18 = vunpack.c.h.bf16 %v500_v22  ;;  %v752_v44 = vsel %vm650_vm3, %v747_v42, %v751_v40  ;;  %v1010_v14 = vsel %vm922_vm2, %v1005_v49, %v1009_v27  ;;  %v498_v40 = vld [vmem:[%s4301_s2 + $0x98] sm:$0xff] }
  0x52   : > { %4541 = vst [vmem:[#allocation50_spill] sm:$0xff] %v3232_v28  ;;  %888 = vmatpush2.msra.mxu1 %v758_v7  ;;  %1167 = vmatprep.subr.mxu0 %v1016_v62  ;;  %v750_v7 = vsel %vm650_vm3, %v745_v47, %v749_v24  ;;  %v1001_v29 = vrot.slane %v3232_v28, 6  ;;  %v739_v60 = vrot.slane %v3192_v33, 5  ;;  %v3253_v20 = vunpack.c.l.bf16 %v500_v22 }
  0x53   : > { %4542 = vst [vmem:[#allocation51_spill] sm:$0xff] %v3240_v18  ;;  %460 = vmatprep.mubr.f32.mxu0 %v4522_v51  ;;  %889 = vmatprep.subr.mxu1 %v756_v32  ;;  %v1008_v62 = vsel %vm922_vm2, %v1003_v54, %v1007_v50  ;;  %v999_v56 = vrot.slane %v3240_v18, 6  ;;  %v748_v24 = vsel %vm650_vm3, %v743_v17, %v747_v42  ;;  %v737_v32 = vrot.slane %v3197_v37, 5  ;;  %v242_v42 = vld [vmem:[%s4300_s1 + $0x80] sm:$0xff] }
  0x54   : > { %1168 = vmatpush2.msra.mxu0 %v1014_v25  ;;  %890 = vmatpush2.msra.mxu1 %v754_v61  ;;  %4543 = vst [vmem:[#allocation52_spill] sm:$0xff] %v3253_v20  ;;  %v746_v27 = vsel %vm650_vm3, %v741_v55, %v745_v47  ;;  %v3262_v50 = vunpack.c.h.bf16 %v499_v0  ;;  %v1006_v22 = vsel %vm922_vm2, %v1001_v29, %v1005_v49  ;;  %v997_v61 = vrot.slane %v3253_v20, 6 }
  0x55   : > { %2657 = vmatmul.mubr.msk.f32.gmra.mxu0 %vm246_vm1, %v241_v34  ;;  %1169 = vmatprep.subr.mxu0 %v1012_v63  ;;  %v735_v25 = vrot.slane %v3205_v41, 5  ;;  %v3267_v33 = vunpack.c.l.bf16 %v499_v0  ;;  %v1004_v47 = vsel %vm922_vm2, %v999_v56, %v1003_v54  ;;  %v733_v63 = vrot.slane %v3218_v21, 5 }
  0x56   : > { %4544 = vst [vmem:[#allocation53_spill] sm:$0xff] %v3262_v50  ;;  %891 = vmatprep.subr.mxu1 %v752_v44  ;;  %1170 = vmatpush2.msra.mxu0 %v1010_v14  ;;  %v995_v34 = vrot.slane %v3262_v50, 6  ;;  %v3275_v44 = vunpack.c.h.bf16 %v498_v40  ;;  %v744_v49 = vsel %vm650_vm3, %v739_v60, %v743_v17  ;;  %v1002_v0 = vsel %vm922_vm2, %v997_v61, %v1001_v29 }
  0x57   : > { %4545 = vst [vmem:[#allocation54_spill] sm:$0xff] %v3267_v33  ;;  %892 = vmatpush2.msra.mxu1 %v750_v7  ;;  %1171 = vmatprep.subr.mxu0 %v1008_v62  ;;  %v742_v14 = vsel %vm650_vm3, %v737_v32, %v741_v55  ;;  %v993_v7 = vrot.slane %v3267_v33, 6  ;;  %v731_v21 = vrot.slane %v3227_v31, 5  ;;  %v3285_v41 = vunpack.c.l.bf16 %v498_v40  ;;  %v243_v40 = vld [vmem:[%s4300_s1 + $0x88] sm:$0xff] }
  0x58   : > { %466 = vmatprep.mubr.f32.mxu0 %v4522_v51  ;;  %893 = vmatprep.subr.mxu1 %v748_v24  ;;  %v1000_v54 = vsel %vm922_vm2, %v995_v34, %v999_v56  ;;  %v991_v62 = vrot.slane %v3275_v44, 6  ;;  %v740_v17 = vsel %vm650_vm3, %v735_v25, %v739_v60  ;;  %v729_v29 = vrot.slane %v3232_v28, 5 }
  0x59   : > { %1172 = vmatpush2.msra.mxu0 %v1006_v22  ;;  %894 = vmatpush2.msra.mxu1 %v746_v27  ;;  %v998_v55 = vsel %vm922_vm2, %v993_v7, %v997_v61  ;;  %v738_v24 = vsel %vm650_vm3, %v733_v63, %v737_v32  ;;  %v989_v56 = vrot.slane %v3285_v41, 6  ;;  %v727_v27 = vrot.slane %v3240_v18, 5 }
  0x5a   : > { %2658 = vmatmul.mubr.msk.f32.gmra.mxu0 %vm246_vm1, %v242_v42  ;;  %1173 = vmatprep.subr.mxu0 %v1004_v47  ;;  %v996_v60 = vsel %vm922_vm2, %v991_v62, %v995_v34  ;;  %v725_v22 = vrot.slane %v3253_v20, 5  ;;  %v736_v61 = vsel %vm650_vm3, %v731_v21, %v735_v25  ;;  %v723_v42 = vrot.slane %v3262_v50, 5 }
  0x5b   : > { %895 = vmatprep.subr.mxu1 %v744_v49  ;;  %1174 = vmatpush2.msra.mxu0 %v1002_v0  ;;  %v994_v32 = vsel %vm922_vm2, %v989_v56, %v993_v7  ;;  %v734_v47 = vsel %vm650_vm3, %v729_v29, %v733_v63  ;;  %v4546_v49 = vrot.slane %v2733_v4, 6  ;;  %v721_v34 = vrot.slane %v3267_v33, 5 }
  0x5c   : > { %896 = vmatpush2.msra.mxu1 %v742_v14  ;;  %1175 = vmatprep.subr.mxu0 %v1000_v54  ;;  %v4547_v25 = vrot.slane %v2737_v6, 6  ;;  %v719_v7 = vrot.slane %v3275_v44, 5  ;;  %v730_v63 = vsel %vm650_vm3, %v725_v22, %v729_v29  ;;  %v717_v54 = vrot.slane %v3285_v41, 5 }
  0x5d   : > { %472 = vmatprep.mubr.f32.mxu0 %v4522_v51  ;;  %897 = vmatprep.subr.mxu1 %v740_v17  ;;  %v992_v0 = vsel %vm922_vm2, %v4546_v49, %v991_v62  ;;  %v732_v51 = vsel %vm650_vm3, %v727_v27, %v731_v21  ;;  %v1254_v62 = vrot.slane %v2731_v3, 4  ;;  %v1250_v17 = vrot.slane %v2748_v9, 4 }
  0x5e   : > { %1176 = vmatpush2.msra.mxu0 %v998_v55  ;;  %898 = vmatpush2.msra.mxu1 %v738_v24  ;;  %v990_v14 = vsel %vm922_vm2, %v4547_v25, %v989_v56  ;;  %v728_v21 = vsel %vm650_vm3, %v723_v42, %v727_v27  ;;  %v726_v55 = vsel %vm650_vm3, %v721_v34, %v725_v22  ;;  %v4361_v56 = vrot.slane %v2733_v4, 4 }
  0x5f   : > { %2659 = vmatmul.mubr.msk.f32.gmra.mxu0 %vm246_vm1, %v243_v40  ;;  %1177 = vmatprep.subr.mxu0 %v996_v60  ;;  %v3321_v24 = vsel %vm301_vm0, %v1250_v17, %v1254_v62  ;;  %v724_v29 = vsel %vm650_vm3, %v719_v7, %v723_v42  ;;  %v722_v40 = vsel %vm650_vm3, %v717_v54, %v721_v34  ;;  %v4548_v27 = vrot.slane %v2733_v4, 5 }
  0x60   : > { %899 = vmatprep.subr.mxu1 %v736_v61  ;;  %1178 = vmatpush2.msra.mxu0 %v994_v32  ;;  %v4549_v22 = vrot.slane %v2737_v6, 5  ;;  %v3336_v32 = vsel %vm301_vm0, %v1254_v62, %v4361_v56  ;;  %v1248_v42 = vrot.slane %v2750_v10, 4  ;;  %v1244_v34 = vrot.slane %v2754_v12, 4 }
  0x61   : > { %900 = vmatpush2.msra.mxu1 %v734_v47  ;;  %1179 = vmatprep.subr.mxu0 %v992_v0  ;;  %v720_v60 = vsel %vm650_vm3, %v4548_v27, %v719_v7  ;;  %v1246_v47 = vrot.slane %v2752_v11, 4  ;;  %v1252_v0 = vrot.slane %v2735_v5, 4  ;;  %v1240_v7 = vrot.slane %v2789_v35, 4 }
  0x62   : > { %901 = vmatprep.subr.mxu1 %v732_v51  ;;  %1180 = vmatpush2.msra.mxu0 %v990_v14  ;;  %v718_v61 = vsel %vm650_vm3, %v4549_v22, %v717_v54  ;;  %v1242_v51 = vrot.slane %v2773_v26, 4  ;;  %v1238_v54 = vrot.slane %v2794_v38, 4  ;;  %vm1558_vm5 = vcmask 1044480  }
  0x63   : > { %902 = vmatpush2.msra.mxu1 %v730_v63  ;;  %1477 = vmatprep.subr.mxu0 %v3321_v24  ;;  %v1253_v14 = vsel %vm301_vm0, %v1248_v42, %v1252_v0  ;;  %v1251_v63 = vsel %vm301_vm0, %v1246_v47, %v1250_v17  ;;  %v1245_v22 = vsel %vm301_vm0, %v1240_v7, %v1244_v34  ;;  %v1232_v17 = vrot.slane %v2828_v57, 4 }
  0x64   : > { %903 = vmatprep.subr.mxu1 %v728_v21  ;;  %v1249_v21 = vsel %vm301_vm0, %v1244_v34, %v1248_v42  ;;  %v1230_v42 = vrot.slane %v2841_v1, 4  ;;  %vm2199_vm6 = vcmask 1046528  }
  0x65   : > { %904 = vmatpush2.msra.mxu1 %v726_v55  ;;  %v1236_v55 = vrot.slane %v2809_v45, 4 }
  0x66   : > { %905 = vmatprep.subr.mxu1 %v724_v29  ;;  %v1247_v29 = vsel %vm301_vm0, %v1242_v51, %v1246_v47 }
  0x67   : > { %906 = vmatpush2.msra.mxu1 %v722_v40  ;;  %v1234_v40 = vrot.slane %v2822_v53, 4  ;;  %v1241_v47 = vsel %vm301_vm0, %v1236_v55, %v1240_v7  ;;  %v1226_v7 = vrot.slane %v2851_v19, 4 }
  0x68   : > { %907 = vmatprep.subr.mxu1 %v720_v60  ;;  %v4364_v60 = vrot.slane %v2737_v6, 4 }
  0x69   : > { %908 = vmatpush2.msra.mxu1 %v718_v61  ;;  %v1243_v61 = vsel %vm301_vm0, %v1238_v54, %v1242_v51  ;;  %v1228_v51 = vrot.slane %v2846_v13, 4 }
  0x6a   : > { %1388 = vmatprep.subr.mxu1 %v3336_v32  ;;  %v3362_v34 = vsel %vm301_vm0, %v1252_v0, %v4364_v60  ;;  %v1222_v0 = vrot.slane %v2876_v39, 4  ;;  %v1218_v60 = vrot.slane %v2887_v48, 4  ;;  %v1216_v39 = vrot.slane %v2902_v59, 4 }
  0xd5   : > { %v372_v49 = vpop.f32.mrf.mxu0 }
  0xd7   : > { %v374_v25 = vpop.f32.mrf.mxu0 }
  0xd8   : > { %1181 = vmatprep.mubr.f32.mxu0 %v374_v25  ;;  %v1239_v25 = vsel %vm301_vm0, %v1234_v40, %v1238_v54  ;;  %v1224_v54 = vrot.slane %v2868_v30, 4 }
  0xd9   : > { %v378_v62 = vpop.f32.mrf.mxu0  ;;  %1182 = vmatmul.mubr.f32.vlgmr.msra.gmra.mxu0 %v372_v49 }
  0xda   : > { %1478 = vmatpush1.msra.mxu0 %v1253_v14  ;;  %v1229_v30 = vsel %vm301_vm0, %v1224_v54, %v1228_v51 }
  0xdb   : > { %v380_v27 = vpop.f32.mrf.mxu0  ;;  %1479 = vmatprep.subr.mxu0 %v1251_v63 }
  0xdc   : > { %1187 = vmatprep.mubr.f32.mxu0 %v380_v27  ;;  %1480 = vmatpush1.msra.mxu0 %v1249_v21  ;;  %v1237_v27 = vsel %vm301_vm0, %v1232_v17, %v1236_v55 }
  0xdd   : > { %v384_v49 = vpop.f32.mrf.mxu0  ;;  %1188 = vmatmul.mubr.f32.gmra.mxu0 %v378_v62  ;;  %1481 = vmatprep.subr.mxu0 %v1247_v29  ;;  %v1235_v62 = vsel %vm301_vm0, %v1230_v42, %v1234_v40  ;;  %v1220_v40 = vrot.slane %v2881_v43, 4 }
  0xde   : > { %1482 = vmatpush1.msra.mxu0 %v1245_v22 }
  0xdf   : > { %v386_v56 = vpop.f32.mrf.mxu0  ;;  %1483 = vmatprep.subr.mxu0 %v1243_v61 }
  0xe0   : > { %909 = vmatprep.mubr.f32.mxu1 %v386_v56  ;;  %1484 = vmatpush1.msra.mxu0 %v1241_v47  ;;  %v1233_v56 = vsel %vm301_vm0, %v1228_v51, %v1232_v17  ;;  %v1214_v17 = vrot.slane %v2910_v2, 4  ;;  %v1208_v51 = vrot.slane %v2937_v36, 4 }
  0xe1   : > { %v390_v1 = vpop.f32.mrf.mxu0  ;;  %910 = vmatmul.mubr.f32.vlgmr.msra.gmra.mxu1 %v384_v49  ;;  %1485 = vmatprep.subr.mxu0 %v1239_v25  ;;  %v1231_v49 = vsel %vm301_vm0, %v1226_v7, %v1230_v42  ;;  %v1212_v42 = vrot.slane %v2916_v15, 4 }
  0xe2   : > { %1389 = vmatpush1.msra.mxu1 %v3362_v34  ;;  %1486 = vmatpush1.msra.mxu0 %v1237_v27 }
  0xe3   : > { %1390 = vmatprep.subr.mxu1 %v3321_v24  ;;  %v392_v55 = vpop.f32.mrf.mxu0  ;;  %1487 = vmatprep.subr.mxu0 %v1235_v62  ;;  %v1227_v24 = vsel %vm301_vm0, %v1222_v0, %v1226_v7  ;;  %v1206_v7 = vrot.slane %v2946_v46, 4 }
  0xe4   : > { %1391 = vmatpush1.msra.mxu1 %v1253_v14  ;;  %915 = vmatprep.mubr.f32.mxu1 %v392_v55  ;;  %v1225_v14 = vsel %vm301_vm0, %v1220_v40, %v1224_v54  ;;  %v1204_v54 = vrot.slane %v2955_v52, 4 }
  0xe5   : > { %1392 = vmatprep.subr.mxu1 %v1251_v63  ;;  %916 = vmatmul.mubr.f32.gmra.mxu1 %v390_v1  ;;  %v1223_v1 = vsel %vm301_vm0, %v1218_v60, %v1222_v0  ;;  %v1210_v63 = vrot.slane %v2925_v23, 4 }
  0xe6   : > { %1393 = vmatpush1.msra.mxu1 %v1249_v21  ;;  %1488 = vmatpush1.msra.mxu0 %v1233_v56  ;;  %v1221_v21 = vsel %vm301_vm0, %v1216_v39, %v1220_v40  ;;  %v4551_v40 = vld [vmem:[#allocation21_spill] sm:$0xff] }
  0xe7   : > { %1394 = vmatprep.subr.mxu1 %v1247_v29  ;;  %1489 = vmatprep.subr.mxu0 %v1231_v49  ;;  %v1219_v29 = vsel %vm301_vm0, %v1214_v17, %v1218_v60  ;;  %v1215_v0 = vsel %vm301_vm0, %v1210_v63, %v1214_v17  ;;  %v1213_v60 = vsel %vm301_vm0, %v1208_v51, %v1212_v42  ;;  %v1198_v52 = vrot.slane %v4551_v40, 4  ;;  %v4553_v17 = vld [vmem:[#allocation22_spill] sm:$0xff] }
  0xe8   : > { %1395 = vmatpush1.msra.mxu1 %v1245_v22  ;;  %1490 = vmatpush1.msra.mxu0 %v1229_v30  ;;  %v1217_v22 = vsel %vm301_vm0, %v1212_v42, %v1216_v39  ;;  %v1211_v39 = vsel %vm301_vm0, %v1206_v7, %v1210_v63  ;;  %v1194_v40 = vrot.slane %v3015_v8, 4  ;;  %v4558_v8 = vld [vmem:[#allocation31_spill] sm:$0xff] }
  0xe9   : > { %1396 = vmatprep.subr.mxu1 %v1243_v61  ;;  %1491 = vmatprep.subr.mxu0 %v1227_v24  ;;  %v480_v61 = vld [vmem:[%s4301_s2 + $0x8] sm:$0xff] }
  0xea   : > { %1397 = vmatpush1.msra.mxu1 %v1241_v47  ;;  %1492 = vmatpush1.msra.mxu0 %v1225_v14  ;;  %v1202_v47 = vrot.slane %v2960_v58, 4  ;;  %v3399_v46 = vunpack.c.h.bf16 %v480_v61  ;;  %v1195_v58 = vrot.slane %v4553_v17, 4 }
  0xeb   : > { %1398 = vmatprep.subr.mxu1 %v1239_v25  ;;  %1493 = vmatprep.subr.mxu0 %v1223_v1  ;;  %v4550_v25 = vld [vmem:[#allocation20_spill] sm:$0xff] }
  0xec   : > { %1399 = vmatpush1.msra.mxu1 %v1237_v27  ;;  %1494 = vmatpush1.msra.mxu0 %v1221_v21  ;;  %v1200_v55 = vrot.slane %v4550_v25, 4  ;;  %4552 = vst [vmem:[#allocation55_spill] sm:$0xff] %v3399_v46  ;;  %v1209_v27 = vsel %vm301_vm0, %v1204_v54, %v1208_v51  ;;  %v1207_v42 = vsel %vm301_vm0, %v1202_v47, %v1206_v7  ;;  %v1473_v51 = vrot.slane %v3399_v46, 4 }
  0xed   : > { %1400 = vmatprep.subr.mxu1 %v1235_v62  ;;  %1495 = vmatprep.subr.mxu0 %v1219_v29  ;;  %v3403_v62 = vunpack.c.l.bf16 %v480_v61  ;;  %v4556_v61 = vld [vmem:[#allocation30_spill] sm:$0xff] }
  0xee   : > { %1401 = vmatpush1.msra.mxu1 %v1233_v56  ;;  %1496 = vmatpush1.msra.mxu0 %v1217_v22  ;;  %v4555_v56 = vld [vmem:[#allocation23_spill] sm:$0xff]  ;;  %v1205_v63 = vsel %vm301_vm0, %v1200_v55, %v1204_v54  ;;  %v1314_v54 = vrot.slane %v3050_v16, 4 }
  0xef   : > { %1402 = vmatprep.subr.mxu1 %v1231_v49  ;;  %1497 = vmatprep.subr.mxu0 %v1215_v0  ;;  %4554 = vst [vmem:[#allocation56_spill] sm:$0xff] %v3403_v62  ;;  %v1197_v25 = vrot.slane %v4555_v56, 4  ;;  %v1203_v49 = vsel %vm301_vm0, %v1198_v52, %v1202_v47  ;;  %v1471_v7 = vrot.slane %v3403_v62, 4  ;;  %v1312_v47 = vrot.slane %v4556_v61, 4 }
  0xf0   : > { %1403 = vmatpush1.msra.mxu1 %v1229_v30  ;;  %1498 = vmatpush1.msra.mxu0 %v1213_v60  ;;  %v1201_v30 = vsel %vm301_vm0, %v1195_v58, %v1200_v55  ;;  %v1310_v62 = vrot.slane %v4558_v8, 4 }
  0xf1   : > { %1404 = vmatprep.subr.mxu1 %v1227_v24  ;;  %1499 = vmatprep.subr.mxu0 %v1211_v39  ;;  %v1199_v24 = vsel %vm301_vm0, %v1197_v25, %v1198_v52  ;;  %v1474_v55 = vsel %vm301_vm0, %v1473_v51, %v1197_v25  ;;  %v1472_v16 = vsel %vm301_vm0, %v1471_v7, %v1194_v40  ;;  %v4562_v51 = vld [vmem:[#allocation34_spill] sm:$0xff]  ;;  %v4564_v7 = vld [vmem:[#allocation35_spill] sm:$0xff] }
  0xf2   : > { %1405 = vmatpush1.msra.mxu1 %v1225_v14  ;;  %1500 = vmatpush1.msra.mxu0 %v1209_v27  ;;  %v1196_v14 = vsel %vm301_vm0, %v1194_v40, %v1195_v58  ;;  %v1304_v8 = vrot.slane %v4562_v51, 4  ;;  %v1315_v40 = vsel %vm301_vm0, %v1310_v62, %v1314_v54 }
  0xf3   : > { %1406 = vmatprep.subr.mxu1 %v1223_v1  ;;  %1501 = vmatprep.subr.mxu0 %v1207_v42  ;;  %v4557_v1 = vld [vmem:[#allocation25_spill] sm:$0xff] }
  0xf4   : > { %1407 = vmatpush1.msra.mxu1 %v1221_v21  ;;  %1502 = vmatpush1.msra.mxu0 %v1205_v63  ;;  %v1318_v46 = vrot.slane %v4557_v1, 4  ;;  %v4559_v21 = vld [vmem:[#allocation27_spill] sm:$0xff] }
  0xf5   : > { %1408 = vmatprep.subr.mxu1 %v1219_v29  ;;  %1503 = vmatprep.subr.mxu0 %v1203_v49  ;;  %v1316_v52 = vrot.slane %v4559_v21, 4  ;;  %v4560_v29 = vld [vmem:[#allocation32_spill] sm:$0xff] }
  0xf6   : > { %1409 = vmatpush1.msra.mxu1 %v1217_v22  ;;  %1504 = vmatpush1.msra.mxu0 %v1201_v30  ;;  %v1308_v56 = vrot.slane %v4560_v29, 4  ;;  %v1319_v58 = vsel %vm301_vm0, %v1314_v54, %v1318_v46  ;;  %v4561_v22 = vld [vmem:[#allocation33_spill] sm:$0xff]  ;;  %v1302_v29 = vrot.slane %v4564_v7, 4  ;;  %v4568_v54 = vld [vmem:[#allocation38_spill] sm:$0xff] }
  0xf7   : > { %1410 = vmatprep.subr.mxu1 %v1215_v0  ;;  %1505 = vmatprep.subr.mxu0 %v1199_v24  ;;  %v1306_v61 = vrot.slane %v4561_v22, 4  ;;  %v1317_v25 = vsel %vm301_vm0, %v1312_v47, %v1316_v52  ;;  %v4563_v0 = vld [vmem:[#allocation26_spill] sm:$0xff] }
  0xf8   : > { %1411 = vmatpush1.msra.mxu1 %v1213_v60  ;;  %1506 = vmatpush1.msra.mxu0 %v1196_v14  ;;  %v1322_v1 = vrot.slane %v4563_v0, 4  ;;  %v4565_v60 = vld [vmem:[#allocation28_spill] sm:$0xff]  ;;  %v1313_v22 = vsel %vm301_vm0, %v1308_v56, %v1312_v47  ;;  %v1296_v0 = vrot.slane %v4568_v54, 4 }
  0xf9   : > { %1412 = vmatprep.subr.mxu1 %v1211_v39  ;;  %1507 = vmatprep.subr.mxu0 %v1474_v55  ;;  %v1320_v21 = vrot.slane %v4565_v60, 4  ;;  %v4566_v39 = vld [vmem:[#allocation36_spill] sm:$0xff]  ;;  %v1311_v51 = vsel %vm301_vm0, %v1306_v61, %v1310_v62  ;;  %v1307_v47 = vsel %vm301_vm0, %v1302_v29, %v1306_v61  ;;  %v4569_v60 = vld [vmem:[#allocation39_spill] sm:$0xff]  ;;  %v4572_v61 = vld [vmem:[#allocation42_spill] sm:$0xff] }
  0xfa   : > { %1413 = vmatpush1.msra.mxu1 %v1209_v27  ;;  %1508 = vmatpush1.msra.mxu0 %v1472_v16  ;;  %v1300_v55 = vrot.slane %v4566_v39, 4  ;;  %v4567_v27 = vld [vmem:[#allocation37_spill] sm:$0xff]  ;;  %v1309_v16 = vsel %vm301_vm0, %v1304_v8, %v1308_v56  ;;  %v1294_v39 = vrot.slane %v4569_v60, 4 }
  0xfb   : > { %1414 = vmatprep.subr.mxu1 %v1207_v42  ;;  %1509 = vmatprep.subr.mxu0 %v1319_v58  ;;  %v1298_v17 = vrot.slane %v4567_v27, 4  ;;  %v1323_v42 = vsel %vm301_vm0, %v1318_v46, %v1322_v1  ;;  %v1288_v1 = vrot.slane %v4572_v61, 4 }
  0xfc   : > { %1415 = vmatpush1.msra.mxu1 %v1205_v63  ;;  %1510 = vmatpush2.msra.mxu0 %v1317_v25  ;;  %v1321_v63 = vsel %vm301_vm0, %v1316_v52, %v1320_v21  ;;  %v1305_v62 = vsel %vm301_vm0, %v1300_v55, %v1304_v8  ;;  %v1301_v46 = vsel %vm301_vm0, %v1296_v0, %v1300_v55  ;;  %v4573_v21 = vld [vmem:[#allocation43_spill] sm:$0xff]  ;;  %v4574_v52 = vld [vmem:[#allocation44_spill] sm:$0xff] }
  0xfd   : > { %1416 = vmatprep.subr.mxu1 %v1203_v49  ;;  %1511 = vmatprep.subr.mxu0 %v1315_v40  ;;  %v4570_v49 = vld [vmem:[#allocation40_spill] sm:$0xff]  ;;  %v1303_v56 = vsel %vm301_vm0, %v1298_v17, %v1302_v29  ;;  %v1286_v8 = vrot.slane %v4573_v21, 4  ;;  %v1284_v29 = vrot.slane %v4574_v52, 4 }
  0xfe   : > { %1417 = vmatpush1.msra.mxu1 %v1201_v30  ;;  %1512 = vmatpush2.msra.mxu0 %v1313_v22  ;;  %v1292_v27 = vrot.slane %v4570_v49, 4  ;;  %v4571_v30 = vld [vmem:[#allocation41_spill] sm:$0xff]  ;;  %v3453_v49 = vpop.f32.mrf.mxu0 }
  0xff   : > { %1418 = vmatprep.subr.mxu1 %v1199_v24  ;;  %1513 = vmatprep.subr.mxu0 %v1311_v51  ;;  %v1290_v54 = vrot.slane %v4571_v30, 4  ;;  %v1299_v24 = vsel %vm301_vm0, %v1294_v39, %v1298_v17  ;;  %v4575_v30 = vld [vmem:[#allocation45_spill] sm:$0xff] }
 0x100   : > { %1419 = vmatpush1.msra.mxu1 %v1196_v14  ;;  %1514 = vmatpush2.msra.mxu0 %v1309_v16  ;;  %v1297_v14 = vsel %vm301_vm0, %v1292_v27, %v1296_v0  ;;  %v1282_v55 = vrot.slane %v4575_v30, 4  ;;  %v1293_v17 = vsel %vm301_vm0, %v1288_v1, %v1292_v27  ;;  %v4576_v0 = vld [vmem:[#allocation47_spill] sm:$0xff]  ;;  %v1274_v27 = vrot.slane %v3227_v31, 4  ;;  %v398_v21 = vpop.f32.mrf.mxu0 }
 0x101   : > { %1420 = vmatprep.subr.mxu1 %v1323_v42  ;;  %1515 = vmatprep.subr.mxu0 %v1307_v47  ;;  %v1295_v42 = vsel %vm301_vm0, %v1290_v54, %v1294_v39  ;;  %v1278_v52 = vrot.slane %v4576_v0, 4  ;;  %v4577_v39 = vld [vmem:[#allocation48_spill] sm:$0xff] }
 0x102   : > { %1421 = vmatpush2.msra.mxu1 %v1321_v63  ;;  %1516 = vmatpush2.msra.mxu0 %v1305_v62  ;;  %v1280_v63 = vrot.slane %v3197_v37, 4  ;;  %v1276_v30 = vrot.slane %v4577_v39, 4  ;;  %v3470_v31 = vpop.f32.mrf.mxu0 }
 0x103   : > { %1422 = vmatprep.subr.mxu1 %v1319_v58  ;;  %1517 = vmatprep.subr.mxu0 %v1303_v56  ;;  %v1291_v58 = vsel %vm301_vm0, %v1286_v8, %v1290_v54  ;;  %v1272_v54 = vrot.slane %v3232_v28, 4 }
 0x104   : > { %1423 = vmatpush2.msra.mxu1 %v1317_v25  ;;  %1518 = vmatpush2.msra.mxu0 %v1301_v46  ;;  %v1289_v25 = vsel %vm301_vm0, %v1284_v29, %v1288_v1  ;;  %v1270_v1 = vrot.slane %v3240_v18, 4 }
 0x105   : > { %1424 = vmatprep.subr.mxu1 %v1315_v40  ;;  %1519 = vmatprep.subr.mxu0 %v1299_v24  ;;  %v1287_v40 = vsel %vm301_vm0, %v1282_v55, %v1286_v8  ;;  %v1268_v8 = vrot.slane %v3253_v20, 4 }
 0x106   : > { %1425 = vmatpush2.msra.mxu1 %v1313_v22  ;;  %1520 = vmatpush2.msra.mxu0 %v1297_v14  ;;  %v1285_v22 = vsel %vm301_vm0, %v1280_v63, %v1284_v29  ;;  %v1266_v29 = vrot.slane %v3262_v50, 4  ;;  %v3480_v50 = vpop.f32.mrf.mxu0 }
 0x107   : > { %1426 = vmatprep.subr.mxu1 %v1311_v51  ;;  %1521 = vmatprep.subr.mxu0 %v1295_v42  ;;  %v1283_v51 = vsel %vm301_vm0, %v1278_v52, %v1282_v55  ;;  %v1264_v55 = vrot.slane %v3267_v33, 4 }
 0x108   : > { %1427 = vmatpush2.msra.mxu1 %v1309_v16  ;;  %1522 = vmatpush2.msra.mxu0 %v1293_v17  ;;  %v1281_v16 = vsel %vm301_vm0, %v1276_v30, %v1280_v63  ;;  %v1262_v63 = vrot.slane %v3275_v44, 4 }
 0x109   : > { %1428 = vmatprep.subr.mxu1 %v1307_v47  ;;  %1523 = vmatprep.subr.mxu0 %v1291_v58  ;;  %v1279_v47 = vsel %vm301_vm0, %v1274_v27, %v1278_v52  ;;  %v1260_v52 = vrot.slane %v3285_v41, 4 }
 0x10a   : > { %1429 = vmatpush2.msra.mxu1 %v1305_v62  ;;  %1524 = vmatpush2.msra.mxu0 %v1289_v25  ;;  %v1277_v62 = vsel %vm301_vm0, %v1272_v54, %v1276_v30  ;;  %v1269_v30 = vsel %vm301_vm0, %v1264_v55, %v1268_v8 }
 0x10b   : > { %1430 = vmatprep.subr.mxu1 %v1303_v56  ;;  %1525 = vmatprep.subr.mxu0 %v1287_v40  ;;  %v1275_v56 = vsel %vm301_vm0, %v1270_v1, %v1274_v27  ;;  %v4578_v27 = vrot.slane %v2733_v4, 4 }
 0x10c   : > { %1431 = vmatpush2.msra.mxu1 %v1301_v46  ;;  %1526 = vmatpush2.msra.mxu0 %v1285_v22  ;;  %v1273_v46 = vsel %vm301_vm0, %v1268_v8, %v1272_v54  ;;  %v4387_v8 = vrot.slane %v2735_v5, 2 }
 0x10d   : > { %1432 = vmatprep.subr.mxu1 %v1299_v24  ;;  %1527 = vmatprep.subr.mxu0 %v1283_v51  ;;  %v1271_v24 = vsel %vm301_vm0, %v1266_v29, %v1270_v1  ;;  %v1893_v1 = vrot.slane %v2750_v10, 2 }
 0x10e   : > { %1433 = vmatpush2.msra.mxu1 %v1297_v14  ;;  %1528 = vmatpush2.msra.mxu0 %v1281_v16  ;;  %v1267_v14 = vsel %vm301_vm0, %v1262_v63, %v1266_v29  ;;  %v1617_v29 = vrot.slane %v2750_v10, 3 }
 0x10f   : > { %1434 = vmatprep.subr.mxu1 %v1295_v42  ;;  %1529 = vmatprep.subr.mxu0 %v1279_v47  ;;  %v1265_v42 = vsel %vm301_vm0, %v1260_v52, %v1264_v55 }
 0x110   : > { %1435 = vmatpush2.msra.mxu1 %v1293_v17  ;;  %1530 = vmatpush2.msra.mxu0 %v1277_v62  ;;  %v408_v17 = vpop.f32.mrf.mxu0 }
 0x111   : > { %1436 = vmatprep.subr.mxu1 %v1291_v58  ;;  %1531 = vmatprep.subr.mxu0 %v1275_v56  ;;  %v1263_v58 = vsel %vm301_vm0, %v4578_v27, %v1262_v63  ;;  %v1613_v63 = vrot.slane %v2754_v12, 3 }
 0x112   : > { %1437 = vmatpush2.msra.mxu1 %v1289_v25  ;;  %1532 = vmatpush2.msra.mxu0 %v1273_v46  ;;  %v4579_v25 = vrot.slane %v2737_v6, 4 }
 0x113   : > { %1438 = vmatprep.subr.mxu1 %v1287_v40  ;;  %1533 = vmatprep.subr.mxu0 %v1271_v24  ;;  %v1895_v40 = vrot.slane %v2748_v9, 2 }
 0x114   : > { %1439 = vmatpush2.msra.mxu1 %v1285_v22  ;;  %1534 = vmatpush2.msra.mxu0 %v1269_v30  ;;  %v1261_v54 = vsel %vm301_vm0, %v4579_v25, %v1260_v52  ;;  %v4388_v22 = vrot.slane %v2731_v3, 2  ;;  %v1607_v25 = vrot.slane %v2794_v38, 3 }
 0x115   : > { %1440 = vmatprep.subr.mxu1 %v1283_v51  ;;  %1535 = vmatprep.subr.mxu0 %v1267_v14  ;;  %v410_v51 = vpop.f32.mrf.mxu0 }
 0x116   : > { %1441 = vmatpush2.msra.mxu1 %v1281_v16  ;;  %1536 = vmatpush2.msra.mxu0 %v1265_v42  ;;  %v1891_v16 = vrot.slane %v2752_v11, 2  ;;  %v3505_v55 = vsel %vm1834_vm4, %v1895_v40, %v4388_v22 }
 0x117   : > { %1442 = vmatprep.subr.mxu1 %v1279_v47  ;;  %1452 = vmatprep.mubr.f32.mxu1 %v398_v21  ;;  %v1619_v21 = vrot.slane %v2748_v9, 3  ;;  %v4390_v47 = vrot.slane %v2731_v3, 3  ;;  %4580 = vst [vmem:[#allocation26_spill] sm:$0xff] %v3505_v55 }
 0x118   : > { %1443 = vmatpush2.msra.mxu1 %v1277_v62  ;;  %1537 = vmatprep.subr.mxu0 %v1263_v58  ;;  %v4389_v62 = vrot.slane %v2735_v5, 3  ;;  %v3516_v52 = vsel %vm1834_vm4, %v1891_v16, %v1895_v40  ;;  %v1618_v40 = vsel %vm1558_vm5, %v1613_v63, %v1617_v29 }
 0x119   : > { %1444 = vmatprep.subr.mxu1 %v1275_v56  ;;  %1538 = vmatpush2.msra.mxu0 %v1261_v54  ;;  %v1615_v56 = vrot.slane %v2752_v11, 3  ;;  %v1624_v27 = vsel %vm1558_vm5, %v1619_v21, %v4390_v47  ;;  %v1883_v47 = vrot.slane %v2794_v38, 2 }
 0x11a   : > { %1445 = vmatpush2.msra.mxu1 %v1273_v46  ;;  %1539 = vmatprep.subr.mxu0 %v3336_v32  ;;  %v414_v32 = vpop.f32.mrf.mxu0  ;;  %v1611_v46 = vrot.slane %v2773_v26, 3 }
 0x11b   : > { %1446 = vmatprep.subr.mxu1 %v1271_v24  ;;  %1540 = vmatpush2.msra.mxu0 %v3362_v34  ;;  %v3512_v34 = vsel %vm1834_vm4, %v1893_v1, %v4387_v8  ;;  %v1609_v24 = vrot.slane %v2789_v35, 3  ;;  %v1605_v8 = vrot.slane %v2809_v45, 3 }
 0x11c   : > { %1447 = vmatpush2.msra.mxu1 %v1269_v30  ;;  %1541 = vmatprep.mubr.f32.mxu0 %v410_v51  ;;  %4581 = vst [vmem:[#allocation28_spill] sm:$0xff] %v3512_v34  ;;  %v1889_v30 = vrot.slane %v2754_v12, 2  ;;  %v416_v51 = vpop.f32.mrf.mxu0 }
 0x11d   : > { %1448 = vmatprep.subr.mxu1 %v1267_v14  ;;  %1542 = vmatmul.mubr.f32.vlgmr.msra.gmra.mxu0 %v408_v17  ;;  %v1622_v14 = vsel %vm1558_vm5, %v1617_v29, %v4389_v62  ;;  %v1887_v17 = vrot.slane %v2773_v26, 2  ;;  %v1614_v22 = vsel %vm1558_vm5, %v1609_v24, %v1613_v63  ;;  %v1603_v29 = vrot.slane %v2822_v53, 3  ;;  %v4582_v63 = vld [vmem:[#allocation5_spill] sm:$0xff] }
 0x11e   : > { %1449 = vmatpush2.msra.mxu1 %v1265_v42  ;;  %2029 = vmatprep.subr.mxu0 %v3505_v55  ;;  %v1620_v42 = vsel %vm1558_vm5, %v1615_v56, %v1619_v21  ;;  %v3538_v62 = vsel %vm1834_vm4, %v1889_v30, %v1893_v1  ;;  %v1612_v21 = vsel %vm1558_vm5, %v1607_v25, %v1611_v46  ;;  %v1881_v1 = vrot.slane %v2809_v45, 2  ;;  %v4583_v55 = vld [vmem:[#allocation8_spill] sm:$0xff] }
 0x11f   : > { %1450 = vmatprep.subr.mxu1 %v1263_v58  ;;  %2030 = vmatpush1.msra.mxu0 %v3512_v34  ;;  %v1616_v58 = vsel %vm1558_vm5, %v1611_v46, %v1615_v56  ;;  %v3547_v56 = vsel %vm1834_vm4, %v1887_v17, %v1891_v16  ;;  %v1597_v46 = vrot.slane %v2846_v13, 3  ;;  %v1877_v34 = vrot.slane %v2828_v57, 2 }
 0x120   : > { %1451 = vmatpush2.msra.mxu1 %v1261_v54  ;;  %2031 = vmatprep.subr.mxu0 %v3516_v52  ;;  %v1885_v54 = vrot.slane %v2789_v35, 2 }
 0x121   : > { %1453 = vmatmul.mubr.f32.vlgmr.msra.gmra.mxu1 %v3453_v49  ;;  %1753 = vmatprep.subr.mxu1 %v1624_v27  ;;  %v1601_v49 = vrot.slane %v2828_v57, 3  ;;  %v1599_v27 = vrot.slane %v4582_v63, 3  ;;  %v3566_v57 = vsel %vm1834_vm4, %v1883_v47, %v1887_v17 }
 0x122   : > { %1754 = vmatpush1.msra.mxu1 %v1622_v14  ;;  %1458 = vmatprep.mubr.f32.mxu1 %v3480_v50  ;;  %v1879_v14 = vrot.slane %v2822_v53, 2  ;;  %v1610_v50 = vsel %vm1558_vm5, %v1605_v8, %v1609_v24  ;;  %v3559_v16 = vsel %vm1834_vm4, %v1885_v54, %v1889_v30  ;;  %v1873_v53 = vrot.slane %v2846_v13, 2 }
 0x123   : > { %1755 = vmatprep.subr.mxu1 %v1620_v42  ;;  %1547 = vmatprep.mubr.f32.mxu0 %v416_v51  ;;  %v1595_v42 = vrot.slane %v2851_v19, 3  ;;  %v1875_v51 = vrot.slane %v4582_v63, 2  ;;  %v1608_v24 = vsel %vm1558_vm5, %v1603_v29, %v1607_v25  ;;  %v1606_v45 = vsel %vm1558_vm5, %v1601_v49, %v1605_v8 }
 0x124   : > { %1756 = vmatpush1.msra.mxu1 %v1618_v40  ;;  %2032 = vmatpush1.msra.mxu0 %v3538_v62  ;;  %v1593_v40 = vrot.slane %v4583_v55, 3  ;;  %v3572_v30 = vsel %vm1834_vm4, %v1881_v1, %v1885_v54  ;;  %v1604_v63 = vsel %vm1558_vm5, %v1599_v27, %v1603_v29  ;;  %v1602_v8 = vsel %vm1558_vm5, %v1597_v46, %v1601_v49 }
 0x125   : > { %1459 = vmatmul.mubr.f32.gmra.mxu1 %v3470_v31  ;;  %1757 = vmatprep.subr.mxu1 %v1616_v58  ;;  %v4584_v31 = vld [vmem:[#allocation9_spill] sm:$0xff]  ;;  %v3582_v25 = vsel %vm1834_vm4, %v1877_v34, %v1881_v1  ;;  %v1600_v17 = vsel %vm1558_vm5, %v1595_v42, %v1599_v27  ;;  %v1589_v54 = vrot.slane %v2881_v43, 3  ;;  %v3592_v29 = vsel %vm1834_vm4, %v1873_v53, %v1877_v34 }
 0x126   : > { %1758 = vmatpush1.msra.mxu1 %v1614_v22  ;;  %1548 = vmatmul.mubr.f32.gmra.mxu0 %v414_v32  ;;  %v1591_v58 = vrot.slane %v4584_v31, 3  ;;  %v3576_v22 = vsel %vm1834_vm4, %v1879_v14, %v1883_v47  ;;  %v1871_v32 = vrot.slane %v2851_v19, 2  ;;  %4585 = vst [vmem:[#allocation57_spill] sm:$0xff] %v3582_v25  ;;  %v3588_v47 = vsel %vm1834_vm4, %v1875_v51, %v1879_v14 }
 0x127   : > { %1759 = vmatprep.subr.mxu1 %v1612_v21  ;;  %2033 = vmatprep.subr.mxu0 %v3547_v56  ;;  %4586 = vst [vmem:[#allocation58_spill] sm:$0xff] %v3588_v47  ;;  %v1598_v21 = vsel %vm1558_vm5, %v1593_v40, %v1597_v46  ;;  %4587 = vst [vmem:[#allocation59_spill] sm:$0xff] %v3592_v29  ;;  %v1869_v49 = vrot.slane %v4583_v55, 2  ;;  %v1587_v27 = vrot.slane %v2887_v48, 3  ;;  %v1865_v34 = vrot.slane %v2881_v43, 2 }
 0x128   : > { %1760 = vmatpush1.msra.mxu1 %v1610_v50  ;;  %2034 = vmatpush1.msra.mxu0 %v3559_v16  ;;  %v1596_v1 = vsel %vm1558_vm5, %v1591_v58, %v1595_v42  ;;  %v1867_v50 = vrot.slane %v4584_v31, 2  ;;  %v3602_v14 = vsel %vm1834_vm4, %v1871_v32, %v1875_v51  ;;  %v1863_v46 = vrot.slane %v2887_v48, 2 }
 0x129   : > { %1761 = vmatprep.subr.mxu1 %v1608_v24  ;;  %2035 = vmatprep.subr.mxu0 %v3566_v57  ;;  %v1585_v24 = vrot.slane %v2902_v59, 3  ;;  %4588 = vst [vmem:[#allocation60_spill] sm:$0xff] %v3602_v14  ;;  %v1594_v42 = vsel %vm1558_vm5, %v1589_v54, %v1593_v40  ;;  %v1581_v31 = vrot.slane %v2916_v15, 3  ;;  %v1579_v55 = vrot.slane %v2925_v23, 3 }
 0x12a   : > { %1762 = vmatpush1.msra.mxu1 %v1606_v45  ;;  %2036 = vmatpush1.msra.mxu0 %v3572_v30  ;;  %v1583_v45 = vrot.slane %v2910_v2, 3  ;;  %v3614_v51 = vsel %vm1834_vm4, %v1869_v49, %v1873_v53  ;;  %v1859_v43 = vrot.slane %v2910_v2, 2  ;;  %v1857_v48 = vrot.slane %v2916_v15, 2  ;;  %v4595_v2 = vld [vmem:[#allocation18_spill] sm:$0xff] }
 0x12b   : > { %1763 = vmatprep.subr.mxu1 %v1604_v63  ;;  %2037 = vmatprep.subr.mxu0 %v3576_v22  ;;  %v1861_v63 = vrot.slane %v2902_v59, 2  ;;  %4589 = vst [vmem:[#allocation61_spill] sm:$0xff] %v3614_v51  ;;  %v1592_v40 = vsel %vm1558_vm5, %v1587_v27, %v1591_v58  ;;  %v3622_v59 = vsel %vm1834_vm4, %v1867_v50, %v1871_v32  ;;  %v1855_v58 = vrot.slane %v2925_v23, 2 }
 0x12c   : > { %1764 = vmatpush1.msra.mxu1 %v1602_v8  ;;  %2038 = vmatpush1.msra.mxu0 %v3582_v25  ;;  %v1577_v8 = vrot.slane %v2937_v36, 3  ;;  %4590 = vst [vmem:[#allocation62_spill] sm:$0xff] %v3622_v59  ;;  %v3628_v53 = vsel %vm1834_vm4, %v1865_v34, %v1869_v49  ;;  %v1588_v15 = vsel %vm1558_vm5, %v1583_v45, %v1587_v27  ;;  %v1573_v49 = vrot.slane %v4595_v2, 3 }
 0x12d   : > { %1765 = vmatprep.subr.mxu1 %v1600_v17  ;;  %2039 = vmatprep.subr.mxu0 %v3588_v47  ;;  %v1590_v17 = vsel %vm1558_vm5, %v1585_v24, %v1589_v54  ;;  %v4591_v47 = vld [vmem:[#allocation17_spill] sm:$0xff]  ;;  %4592 = vst [vmem:[#allocation63_spill] sm:$0xff] %v3628_v53  ;;  %v1586_v32 = vsel %vm1558_vm5, %v1581_v31, %v1585_v24  ;;  %v1853_v24 = vrot.slane %v2937_v36, 2 }
 0x12e   : > { %1766 = vmatpush1.msra.mxu1 %v1598_v21  ;;  %2040 = vmatpush1.msra.mxu0 %v3592_v29  ;;  %v1575_v25 = vrot.slane %v4591_v47, 3  ;;  %v3632_v21 = vsel %vm1834_vm4, %v1863_v46, %v1867_v50  ;;  %v3638_v54 = vsel %vm1834_vm4, %v1861_v63, %v1865_v34  ;;  %v3644_v27 = vsel %vm1834_vm4, %v1859_v43, %v1863_v46 }
 0x12f   : > { %1767 = vmatprep.subr.mxu1 %v1596_v1  ;;  %2041 = vmatprep.subr.mxu0 %v3602_v14  ;;  %4593 = vst [vmem:[#allocation64_spill] sm:$0xff] %v3632_v21  ;;  %4594 = vst [vmem:[#allocation65_spill] sm:$0xff] %v3638_v54  ;;  %v1584_v1 = vsel %vm1558_vm5, %v1579_v55, %v1583_v45  ;;  %v1582_v50 = vsel %vm1558_vm5, %v1577_v8, %v1581_v31  ;;  %v4598_v45 = vld [vmem:[#allocation19_spill] sm:$0xff]  ;;  %v1849_v46 = vrot.slane %v4595_v2, 2 }
 0x130   : > { %1768 = vmatpush1.msra.mxu1 %v1594_v42  ;;  %2042 = vmatpush1.msra.mxu0 %v3614_v51  ;;  %4596 = vst [vmem:[#allocation66_spill] sm:$0xff] %v3644_v27  ;;  %v3648_v42 = vsel %vm1834_vm4, %v1857_v48, %v1861_v63  ;;  %v1580_v34 = vsel %vm1558_vm5, %v1575_v25, %v1579_v55  ;;  %v1571_v23 = vrot.slane %v4598_v45, 3  ;;  %v4601_v63 = vld [vmem:[#allocation21_spill] sm:$0xff]  ;;  %v1847_v36 = vrot.slane %v4598_v45, 2  ;;  %v4603_v14 = vld [vmem:[#allocation23_spill] sm:$0xff]  ;;  %v4605_v45 = vld [vmem:[#allocation24_spill] sm:$0xff] }
 0x131   : > { %1769 = vmatprep.subr.mxu1 %v1592_v40  ;;  %2043 = vmatprep.subr.mxu0 %v3622_v59  ;;  %4597 = vst [vmem:[#allocation67_spill] sm:$0xff] %v3648_v42  ;;  %v1851_v40 = vrot.slane %v4591_v47, 2  ;;  %v4599_v59 = vld [vmem:[#allocation20_spill] sm:$0xff]  ;;  %v3658_v31 = vsel %vm1834_vm4, %v1855_v58, %v1859_v43  ;;  %v1578_v55 = vsel %vm1558_vm5, %v1573_v49, %v1577_v8  ;;  %v4602_v47 = vld [vmem:[#allocation22_spill] sm:$0xff]  ;;  %v1843_v2 = vrot.slane %v4601_v63, 2 }
 0x132   : > { %1770 = vmatpush1.msra.mxu1 %v1590_v17  ;;  %2044 = vmatpush1.msra.mxu0 %v3628_v53  ;;  %v1569_v51 = vrot.slane %v4599_v59, 3  ;;  %4600 = vst [vmem:[#allocation68_spill] sm:$0xff] %v3658_v31  ;;  %v1567_v17 = vrot.slane %v4601_v63, 3  ;;  %v1565_v53 = vrot.slane %v4602_v47, 3  ;;  %v3670_v43 = vsel %vm1834_vm4, %v1853_v24, %v1857_v48  ;;  %v4610_v63 = vld [vmem:[#allocation56_spill] sm:$0xff] }
 0x133   : > { %1771 = vmatprep.subr.mxu1 %v1588_v15  ;;  %2045 = vmatprep.subr.mxu0 %v3632_v21  ;;  %v1845_v15 = vrot.slane %v4599_v59, 2  ;;  %v1563_v21 = vrot.slane %v4603_v14, 3  ;;  %4604 = vst [vmem:[#allocation69_spill] sm:$0xff] %v3670_v43  ;;  %v1576_v8 = vsel %vm1558_vm5, %v1571_v23, %v1575_v25  ;;  %v3678_v59 = vsel %vm1834_vm4, %v1851_v40, %v1855_v58 }
 0x134   : > { %1772 = vmatpush1.msra.mxu1 %v1586_v32  ;;  %2046 = vmatpush1.msra.mxu0 %v3638_v54  ;;  %v1560_v32 = vrot.slane %v4605_v45, 3  ;;  %v1841_v54 = vrot.slane %v4602_v47, 2  ;;  %4606 = vst [vmem:[#allocation70_spill] sm:$0xff] %v3678_v59  ;;  %v3684_v48 = vsel %vm1834_vm4, %v1849_v46, %v1853_v24  ;;  %v1572_v47 = vsel %vm1558_vm5, %v1567_v17, %v1571_v23 }
 0x135   : > { %1773 = vmatprep.subr.mxu1 %v1584_v1  ;;  %2047 = vmatprep.subr.mxu0 %v3644_v27  ;;  %v1574_v1 = vsel %vm1558_vm5, %v1569_v51, %v1573_v49  ;;  %v4607_v27 = vld [vmem:[#allocation55_spill] sm:$0xff]  ;;  %4608 = vst [vmem:[#allocation71_spill] sm:$0xff] %v3684_v48  ;;  %v1839_v25 = vrot.slane %v4603_v14, 2  ;;  %v1570_v58 = vsel %vm1558_vm5, %v1565_v53, %v1569_v51  ;;  %v1559_v24 = vrot.slane %v4610_v63, 3 }
 0x136   : > { %1774 = vmatpush1.msra.mxu1 %v1582_v50  ;;  %2048 = vmatpush1.msra.mxu0 %v3648_v42  ;;  %v1562_v29 = vrot.slane %v4607_v27, 3  ;;  %v3688_v50 = vsel %vm1834_vm4, %v1847_v36, %v1851_v40  ;;  %v3694_v49 = vsel %vm1834_vm4, %v1845_v15, %v1849_v46  ;;  %v3700_v23 = vsel %vm1834_vm4, %v1843_v2, %v1847_v36 }
 0x137   : > { %1775 = vmatprep.subr.mxu1 %v1580_v34  ;;  %2049 = vmatprep.subr.mxu0 %v3658_v31  ;;  %4609 = vst [vmem:[#allocation72_spill] sm:$0xff] %v3688_v50  ;;  %v1568_v34 = vsel %vm1558_vm5, %v1563_v21, %v1567_v17  ;;  %4611 = vst [vmem:[#allocation56_spill] sm:$0xff] %v3700_v23  ;;  %v1566_v40 = vsel %vm1558_vm5, %v1560_v32, %v1565_v53  ;;  %v1836_v51 = vrot.slane %v4605_v45, 2  ;;  %v4613_v17 = vld [vmem:[#allocation29_spill] sm:$0xff]  ;;  %v4615_v53 = vld [vmem:[#allocation30_spill] sm:$0xff] }
 0x138   : > { %1776 = vmatpush1.msra.mxu1 %v1578_v55  ;;  %2050 = vmatpush1.msra.mxu0 %v3670_v43  ;;  %v3704_v55 = vsel %vm1834_vm4, %v1841_v54, %v1845_v15  ;;  %v1564_v46 = vsel %vm1558_vm5, %v1562_v29, %v1563_v21  ;;  %v1683_v14 = vrot.slane %v4613_v17, 3  ;;  %v3714_v36 = vsel %vm1834_vm4, %v1839_v25, %v1843_v2  ;;  %v4616_v45 = vld [vmem:[#allocation27_spill] sm:$0xff] }
 0x139   : > { %1777 = vmatprep.subr.mxu1 %v1576_v8  ;;  %2051 = vmatprep.subr.mxu0 %v3678_v59  ;;  %4612 = vst [vmem:[#allocation73_spill] sm:$0xff] %v3704_v55  ;;  %v4614_v8 = vld [vmem:[#allocation25_spill] sm:$0xff]  ;;  %v1681_v15 = vrot.slane %v4615_v53, 3  ;;  %v1561_v29 = vsel %vm1558_vm5, %v1559_v24, %v1560_v32  ;;  %v4617_v21 = vld [vmem:[#allocation31_spill] sm:$0xff]  ;;  %v3726_v2 = vsel %vm1834_vm4, %v1836_v51, %v1841_v54  ;;  %v4619_v24 = vrot.slane %v4607_v27, 2 }
 0x13a   : > { %1778 = vmatpush1.msra.mxu1 %v1574_v1  ;;  %2052 = vmatpush1.msra.mxu0 %v3684_v48  ;;  %v1687_v43 = vrot.slane %v4614_v8, 3  ;;  %v1685_v1 = vrot.slane %v4616_v45, 3  ;;  %v1679_v31 = vrot.slane %v4617_v21, 3  ;;  %v1963_v59 = vrot.slane %v4614_v8, 2  ;;  %v4621_v8 = vld [vmem:[#allocation33_spill] sm:$0xff] }
 0x13b   : > { %1779 = vmatprep.subr.mxu1 %v1572_v47  ;;  %2053 = vmatprep.subr.mxu0 %v3688_v50  ;;  %v1959_v47 = vrot.slane %v4613_v17, 2  ;;  %v4618_v50 = vld [vmem:[#allocation32_spill] sm:$0xff]  ;;  %v1961_v48 = vrot.slane %v4616_v45, 2  ;;  %v1675_v17 = vrot.slane %v4621_v8, 3  ;;  %v1955_v54 = vrot.slane %v4617_v21, 2 }
 0x13c   : > { %1780 = vmatpush1.msra.mxu1 %v1570_v58  ;;  %2054 = vmatpush1.msra.mxu0 %v3694_v49  ;;  %v1677_v42 = vrot.slane %v4618_v50, 3  ;;  %v1957_v58 = vrot.slane %v4615_v53, 2  ;;  %v1688_v32 = vsel %vm1558_vm5, %v1683_v14, %v1687_v43  ;;  %v1686_v53 = vsel %vm1558_vm5, %v1681_v15, %v1685_v1  ;;  %v4624_v43 = vld [vmem:[#allocation34_spill] sm:$0xff]  ;;  %v4625_v21 = vld [vmem:[#allocation36_spill] sm:$0xff] }
 0x13d   : > { %1781 = vmatprep.subr.mxu1 %v1568_v34  ;;  %2055 = vmatprep.subr.mxu0 %v3700_v23  ;;  %v3736_v34 = vsel %vm1834_vm4, %v4619_v24, %v1839_v25  ;;  %v4622_v45 = vrot.slane %v4610_v63, 2  ;;  %v1953_v23 = vrot.slane %v4618_v50, 2  ;;  %v1684_v25 = vsel %vm1558_vm5, %v1679_v31, %v1683_v14 }
 0x13e   : > { %1782 = vmatpush1.msra.mxu1 %v1566_v40  ;;  %2056 = vmatpush1.msra.mxu0 %v3704_v55  ;;  %4620 = vst [vmem:[#allocation25_spill] sm:$0xff] %v3736_v34  ;;  %v1673_v55 = vrot.slane %v4624_v43, 3  ;;  %v1671_v24 = vrot.slane %v4564_v7, 3  ;;  %v1951_v1 = vrot.slane %v4621_v8, 2  ;;  %v1669_v50 = vrot.slane %v4625_v21, 3  ;;  %v4626_v8 = vld [vmem:[#allocation37_spill] sm:$0xff] }
 0x13f   : > { %1783 = vmatprep.subr.mxu1 %v1564_v46  ;;  %2057 = vmatprep.subr.mxu0 %v3714_v36  ;;  %v3745_v40 = vsel %vm1834_vm4, %v4622_v45, %v1836_v51  ;;  %v1964_v46 = vsel %vm1834_vm4, %v1959_v47, %v1963_v59  ;;  %v1682_v51 = vsel %vm1558_vm5, %v1677_v42, %v1681_v15 }
 0x140   : > { %4623 = vst [vmem:[#allocation27_spill] sm:$0xff] %v3745_v40  ;;  %1784 = vmatpush1.msra.mxu1 %v1561_v29  ;;  %2058 = vmatpush1.msra.mxu0 %v3726_v2  ;;  %v1962_v45 = vsel %vm1834_vm4, %v1957_v58, %v1961_v48  ;;  %v1949_v29 = vrot.slane %v4624_v43, 2  ;;  %v1680_v59 = vsel %vm1558_vm5, %v1675_v17, %v1679_v31  ;;  %v4627_v43 = vld [vmem:[#allocation38_spill] sm:$0xff] }
 0x141   : > { %1785 = vmatprep.subr.mxu1 %v1688_v32  ;;  %2059 = vmatprep.subr.mxu0 %v3736_v34  ;;  %v3762_v14 = vsel %vm1834_vm4, %v1955_v54, %v1959_v47  ;;  %v1667_v32 = vrot.slane %v4626_v8, 3  ;;  %v1947_v34 = vrot.slane %v4564_v7, 2  ;;  %v1678_v48 = vsel %vm1558_vm5, %v1673_v55, %v1677_v42 }
 0x142   : > { %1786 = vmatpush2.msra.mxu1 %v1686_v53  ;;  %2060 = vmatpush1.msra.mxu0 %v3745_v40  ;;  %v3768_v15 = vsel %vm1834_vm4, %v1953_v23, %v1957_v58  ;;  %v1665_v53 = vrot.slane %v4627_v43, 3  ;;  %v1945_v40 = vrot.slane %v4625_v21, 2  ;;  %v1676_v31 = vsel %vm1558_vm5, %v1671_v24, %v1675_v17 }
 0x143   : > { %1787 = vmatprep.subr.mxu1 %v1684_v25  ;;  %2061 = vmatprep.subr.mxu0 %v1964_v46  ;;  %v3774_v47 = vsel %vm1834_vm4, %v1951_v1, %v1955_v54  ;;  %v1663_v7 = vrot.slane %v4569_v60, 3  ;;  %v1943_v25 = vrot.slane %v4626_v8, 2  ;;  %v1674_v42 = vsel %vm1558_vm5, %v1669_v50, %v1673_v55  ;;  %v4630_v46 = vld [vmem:[#allocation40_spill] sm:$0xff] }
 0x144   : > { %1788 = vmatpush2.msra.mxu1 %v1682_v51  ;;  %2062 = vmatpush2.msra.mxu0 %v1962_v45  ;;  %4628 = vst [vmem:[#allocation74_spill] sm:$0xff] %v3774_v47  ;;  %v3781_v58 = vsel %vm1834_vm4, %v1949_v29, %v1953_v23  ;;  %v1661_v51 = vrot.slane %v4630_v46, 3  ;;  %v1941_v45 = vrot.slane %v4627_v43, 2  ;;  %v1672_v17 = vsel %vm1558_vm5, %v1667_v32, %v1671_v24 }
 0x145   : > { %1789 = vmatprep.subr.mxu1 %v1680_v59  ;;  %2063 = vmatprep.subr.mxu0 %v3762_v14  ;;  %4629 = vst [vmem:[#allocation75_spill] sm:$0xff] %v3781_v58  ;;  %v3788_v54 = vsel %vm1834_vm4, %v1947_v34, %v1951_v1  ;;  %v4632_v59 = vld [vmem:[#allocation41_spill] sm:$0xff]  ;;  %v1939_v21 = vrot.slane %v4569_v60, 2  ;;  %v1670_v23 = vsel %vm1558_vm5, %v1665_v53, %v1669_v50  ;;  %v1937_v43 = vrot.slane %v4630_v46, 2 }
 0x146   : > { %1790 = vmatpush2.msra.mxu1 %v1678_v48  ;;  %2064 = vmatpush2.msra.mxu0 %v3768_v15  ;;  %4631 = vst [vmem:[#allocation76_spill] sm:$0xff] %v3788_v54  ;;  %v1659_v8 = vrot.slane %v4632_v59, 3  ;;  %v3795_v55 = vsel %vm1834_vm4, %v1945_v40, %v1949_v29  ;;  %v1657_v48 = vrot.slane %v4572_v61, 3  ;;  %v1668_v24 = vsel %vm1558_vm5, %v1663_v7, %v1667_v32 }
 0x147   : > { %1791 = vmatprep.subr.mxu1 %v1676_v31  ;;  %2065 = vmatprep.subr.mxu0 %v3774_v47  ;;  %v3802_v1 = vsel %vm1834_vm4, %v1943_v25, %v1947_v34  ;;  %v4634_v31 = vld [vmem:[#allocation43_spill] sm:$0xff]  ;;  %v1935_v47 = vrot.slane %v4632_v59, 2  ;;  %v1666_v50 = vsel %vm1558_vm5, %v1661_v51, %v1665_v53  ;;  %v3809_v29 = vsel %vm1834_vm4, %v1941_v45, %v1945_v40  ;;  %v3820_v53 = vpop.f32.mrf.mxu0 }
 0x148   : > { %1792 = vmatpush2.msra.mxu1 %v1674_v42  ;;  %2066 = vmatpush2.msra.mxu0 %v3781_v58  ;;  %4633 = vst [vmem:[#allocation77_spill] sm:$0xff] %v3802_v1  ;;  %v1655_v60 = vrot.slane %v4634_v31, 3  ;;  %v4635_v42 = vld [vmem:[#allocation44_spill] sm:$0xff]  ;;  %v1933_v58 = vrot.slane %v4572_v61, 2  ;;  %v1664_v34 = vsel %vm1558_vm5, %v1659_v8, %v1663_v7  ;;  %v3816_v32 = vsel %vm1834_vm4, %v1939_v21, %v1943_v25 }
 0x149   : > { %1793 = vmatprep.subr.mxu1 %v1672_v17  ;;  %2067 = vmatprep.subr.mxu0 %v3788_v54  ;;  %v1653_v46 = vrot.slane %v4635_v42, 3  ;;  %4636 = vst [vmem:[#allocation78_spill] sm:$0xff] %v3816_v32  ;;  %v4637_v17 = vld [vmem:[#allocation45_spill] sm:$0xff]  ;;  %v1931_v54 = vrot.slane %v4634_v31, 2  ;;  %v1662_v40 = vsel %vm1558_vm5, %v1657_v48, %v1661_v51  ;;  %v1649_v61 = vrot.slane %v3197_v37, 3 }
 0x14a   : > { %1794 = vmatpush2.msra.mxu1 %v1670_v23  ;;  %2068 = vmatpush2.msra.mxu0 %v3795_v55  ;;  %v1651_v59 = vrot.slane %v4637_v17, 3  ;;  %v3825_v23 = vsel %vm1834_vm4, %v1937_v43, %v1941_v45  ;;  %v1929_v7 = vrot.slane %v4635_v42, 2  ;;  %v1660_v25 = vsel %vm1558_vm5, %v1655_v60, %v1659_v8 }
 0x14b   : > { %1795 = vmatprep.subr.mxu1 %v1668_v24  ;;  %2069 = vmatprep.subr.mxu0 %v3802_v1  ;;  %v3832_v31 = vsel %vm1834_vm4, %v1935_v47, %v1939_v21  ;;  %v1647_v24 = vrot.slane %v4576_v0, 3  ;;  %v1927_v1 = vrot.slane %v4637_v17, 2  ;;  %v1658_v51 = vsel %vm1558_vm5, %v1653_v46, %v1657_v48  ;;  %v3850_v48 = vpop.f32.mrf.mxu0 }
 0x14c   : > { %1796 = vmatpush2.msra.mxu1 %v1666_v50  ;;  %2070 = vmatpush2.msra.mxu0 %v3809_v29  ;;  %4638 = vst [vmem:[#allocation79_spill] sm:$0xff] %v3832_v31  ;;  %v3839_v45 = vsel %vm1834_vm4, %v1933_v58, %v1937_v43  ;;  %v1645_v50 = vrot.slane %v4577_v39, 3  ;;  %v1925_v42 = vrot.slane %v3197_v37, 2  ;;  %v1656_v21 = vsel %vm1558_vm5, %v1651_v59, %v1655_v60 }
 0x14d   : > { %1797 = vmatprep.subr.mxu1 %v1664_v34  ;;  %2071 = vmatprep.subr.mxu0 %v3816_v32  ;;  %v3846_v8 = vsel %vm1834_vm4, %v1931_v54, %v1935_v47  ;;  %v4640_v34 = vld [vmem:[#allocation49_spill] sm:$0xff]  ;;  %v1923_v32 = vrot.slane %v4576_v0, 2  ;;  %v1654_v43 = vsel %vm1558_vm5, %v1649_v61, %v1653_v46  ;;  %v1641_v37 = vrot.slane %v3232_v28, 3 }
 0x14e   : > { %1798 = vmatpush2.msra.mxu1 %v1662_v40  ;;  %2072 = vmatpush2.msra.mxu0 %v3825_v23  ;;  %4639 = vst [vmem:[#allocation80_spill] sm:$0xff] %v3846_v8  ;;  %v1643_v17 = vrot.slane %v4640_v34, 3  ;;  %v3855_v40 = vsel %vm1834_vm4, %v1929_v7, %v1933_v58  ;;  %v1921_v60 = vrot.slane %v4577_v39, 2  ;;  %v1652_v47 = vsel %vm1558_vm5, %v1647_v24, %v1651_v59 }
 0x14f   : > { %1799 = vmatprep.subr.mxu1 %v1660_v25  ;;  %2073 = vmatprep.subr.mxu0 %v3832_v31  ;;  %v3862_v0 = vsel %vm1834_vm4, %v1927_v1, %v1931_v54  ;;  %v1639_v25 = vrot.slane %v3240_v18, 3  ;;  %v1919_v31 = vrot.slane %v4640_v34, 2  ;;  %v1650_v58 = vsel %vm1558_vm5, %v1645_v50, %v1649_v61  ;;  %v3880_v61 = vpop.f32.mrf.mxu0 }
 0x150   : > { %1800 = vmatpush2.msra.mxu1 %v1658_v51  ;;  %2074 = vmatpush2.msra.mxu0 %v3839_v45  ;;  %4641 = vst [vmem:[#allocation81_spill] sm:$0xff] %v3862_v0  ;;  %v3869_v46 = vsel %vm1834_vm4, %v1925_v42, %v1929_v7  ;;  %v1637_v51 = vrot.slane %v3253_v20, 3  ;;  %v1917_v39 = vrot.slane %v3232_v28, 2  ;;  %v1648_v54 = vsel %vm1558_vm5, %v1643_v17, %v1647_v24 }
 0x151   : > { %1801 = vmatprep.subr.mxu1 %v1656_v21  ;;  %2075 = vmatprep.subr.mxu0 %v3846_v8  ;;  %v3876_v59 = vsel %vm1834_vm4, %v1923_v32, %v1927_v1  ;;  %v4642_v21 = vld [vmem:[#allocation53_spill] sm:$0xff]  ;;  %v1915_v8 = vrot.slane %v3240_v18, 2  ;;  %v1646_v7 = vsel %vm1558_vm5, %v1641_v37, %v1645_v50  ;;  %v1633_v28 = vrot.slane %v3267_v33, 3 }
 0x152   : > { %1802 = vmatpush2.msra.mxu1 %v1654_v43  ;;  %2076 = vmatpush2.msra.mxu0 %v3855_v40  ;;  %v1635_v34 = vrot.slane %v4642_v21, 3  ;;  %v3885_v43 = vsel %vm1834_vm4, %v1921_v60, %v1925_v42  ;;  %v1913_v24 = vrot.slane %v3253_v20, 2  ;;  %v1644_v1 = vsel %vm1558_vm5, %v1639_v25, %v1643_v17 }
 0x153   : > { %1803 = vmatprep.subr.mxu1 %v1652_v47  ;;  %2077 = vmatprep.subr.mxu0 %v3862_v0  ;;  %4643 = vst [vmem:[#allocation82_spill] sm:$0xff] %v3885_v43  ;;  %v3892_v18 = vsel %vm1834_vm4, %v1919_v31, %v1923_v32  ;;  %v1631_v47 = vrot.slane %v3275_v44, 3  ;;  %v1911_v0 = vrot.slane %v4642_v21, 2  ;;  %v1642_v42 = vsel %vm1558_vm5, %v1637_v51, %v1641_v37 }
 0x154   : > { %1804 = vmatpush2.msra.mxu1 %v1650_v58  ;;  %2078 = vmatpush2.msra.mxu0 %v3869_v46  ;;  %v3899_v50 = vsel %vm1834_vm4, %v1917_v39, %v1921_v60  ;;  %v1629_v58 = vrot.slane %v3285_v41, 3  ;;  %v1909_v20 = vrot.slane %v3267_v33, 2  ;;  %v1640_v32 = vsel %vm1558_vm5, %v1635_v34, %v1639_v25 }
 0x155   : > { %1805 = vmatprep.subr.mxu1 %v1648_v54  ;;  %2079 = vmatprep.subr.mxu0 %v3876_v59  ;;  %v3906_v17 = vsel %vm1834_vm4, %v1915_v8, %v1919_v31  ;;  %v3908_v54 = vpop.f32.mrf.mxu0  ;;  %v1627_v21 = vrot.slane %v2733_v4, 3  ;;  %v1907_v37 = vrot.slane %v3275_v44, 2  ;;  %v1638_v60 = vsel %vm1558_vm5, %v1633_v28, %v1637_v51 }
 0x156   : > { %1806 = vmatpush2.msra.mxu1 %v1646_v7  ;;  %2080 = vmatpush2.msra.mxu0 %v3885_v43  ;;  %v3915_v7 = vsel %vm1834_vm4, %v1913_v24, %v1917_v39  ;;  %v1625_v33 = vrot.slane %v2737_v6, 3  ;;  %v1905_v25 = vrot.slane %v3285_v41, 2  ;;  %v1636_v31 = vsel %vm1558_vm5, %v1631_v47, %v1635_v34 }
 0x157   : > { %1807 = vmatprep.subr.mxu1 %v1644_v1  ;;  %2081 = vmatprep.subr.mxu0 %v3892_v18  ;;  %v3922_v43 = vsel %vm1834_vm4, %v1911_v0, %v1915_v8  ;;  %v1634_v51 = vsel %vm1558_vm5, %v1629_v58, %v1633_v28  ;;  %v3927_v39 = vsel %vm1834_vm4, %v1909_v20, %v1913_v24  ;;  %v1903_v1 = vrot.slane %v2733_v4, 2  ;;  %v432_v8 = vpop.f32.mrf.mxu0 }
 0x158   : > { %1808 = vmatpush2.msra.mxu1 %v1642_v42  ;;  %2082 = vmatpush2.msra.mxu0 %v3899_v50  ;;  %4644 = vst [vmem:[#allocation83_spill] sm:$0xff] %v3927_v39  ;;  %v1632_v42 = vsel %vm1558_vm5, %v1627_v21, %v1631_v47  ;;  %v3933_v34 = vsel %vm1834_vm4, %v1907_v37, %v1911_v0 }
 0x159   : > { %1809 = vmatprep.subr.mxu1 %v1640_v32  ;;  %2083 = vmatprep.subr.mxu0 %v3906_v17  ;;  %v1901_v32 = vrot.slane %v2737_v6, 2  ;;  %v1630_v28 = vsel %vm1558_vm5, %v1625_v33, %v1629_v58  ;;  %v3939_v24 = vsel %vm1834_vm4, %v1905_v25, %v1909_v20  ;;  %v3947_v0 = vsel %vm1834_vm4, %v1903_v1, %v1907_v37 }
 0x15a   : > { %1810 = vmatpush2.msra.mxu1 %v1638_v60  ;;  %2084 = vmatpush2.msra.mxu0 %v3915_v7  ;;  %v4645_v60 = vrot.slane %v2731_v3, 3  ;;  %v4647_v37 = vrot.slane %v2731_v3, 2 }
 0x15b   : > { %1811 = vmatprep.subr.mxu1 %v1636_v31  ;;  %2085 = vmatprep.subr.mxu0 %v3922_v43  ;;  %v4646_v31 = vrot.slane %v2735_v5, 3  ;;  %v3954_v20 = vsel %vm1834_vm4, %v1901_v32, %v1905_v25 }
 0x15c   : > { %1812 = vmatpush2.msra.mxu1 %v1634_v51  ;;  %2086 = vmatpush2.msra.mxu0 %v3927_v39  ;;  %v1628_v47 = vsel %vm1558_vm5, %v4645_v60, %v1627_v21  ;;  %v434_v51 = vpop.f32.mrf.mxu0  ;;  %v2260_v39 = vrot.slane %v2752_v11, 1  ;;  %v4486_v21 = vrot.slane %v2748_v9, 1  ;;  %v4485_v60 = vrot.slane %v2750_v10, 1 }
 0x15d   : > { %1813 = vmatprep.subr.mxu1 %v1632_v42  ;;  %2087 = vmatprep.subr.mxu0 %v3933_v34  ;;  %v1626_v58 = vsel %vm1558_vm5, %v4646_v31, %v1625_v33  ;;  %v3962_v42 = vsel %vm1834_vm4, %v4647_v37, %v1903_v1  ;;  %v4648_v33 = vrot.slane %v2735_v5, 2  ;;  %v2252_v31 = vrot.slane %v2794_v38, 1 }
 0x15e   : > { %1814 = vmatpush2.msra.mxu1 %v1630_v28  ;;  %2088 = vmatpush2.msra.mxu0 %v3939_v24  ;;  %v2258_v28 = vrot.slane %v2754_v12, 1  ;;  %v438_v1 = vpop.f32.mrf.mxu0 }
 0x15f   : > { %1815 = vmatprep.subr.mxu1 %v1628_v47  ;;  %1817 = vmatprep.mubr.f32.mxu1 %v3850_v48  ;;  %v3968_v25 = vsel %vm1834_vm4, %v4648_v33, %v1901_v32  ;;  %v2256_v48 = vrot.slane %v2773_v26, 1  ;;  %v2265_v32 = vsel %vm2199_vm6, %v2260_v39, %v4486_v21  ;;  %v2254_v47 = vrot.slane %v2789_v35, 1 }
 0x160   : > { %2089 = vmatprep.subr.mxu0 %v3947_v0  ;;  %1816 = vmatpush2.msra.mxu1 %v1626_v58  ;;  %v4649_v58 = vld [vmem:[#allocation2_spill] sm:$0xff] }
 0x161   : > { %2090 = vmatpush2.msra.mxu0 %v3954_v20  ;;  %1818 = vmatmul.mubr.f32.vlgmr.msra.gmra.mxu1 %v3820_v53  ;;  %v2263_v53 = vsel %vm2199_vm6, %v2258_v28, %v4485_v60  ;;  %v2250_v37 = vrot.slane %v4649_v58, 1  ;;  %v2259_v33 = vsel %vm2199_vm6, %v2254_v47, %v2258_v28  ;;  %v4651_v60 = vld [vmem:[#allocation4_spill] sm:$0xff]  ;;  %v2240_v28 = vrot.slane %v2851_v19, 1 }
 0x162   : > { %2091 = vmatprep.subr.mxu0 %v3962_v42  ;;  %2118 = vmatprep.subr.mxu1 %v3516_v52  ;;  %v2261_v52 = vsel %vm2199_vm6, %v2256_v48, %v2260_v39  ;;  %v2246_v21 = vrot.slane %v4651_v60, 1  ;;  %v4652_v39 = vld [vmem:[#allocation5_spill] sm:$0xff] }
 0x163   : > { %2092 = vmatpush2.msra.mxu0 %v3968_v25  ;;  %2093 = vmatprep.mubr.f32.mxu0 %v434_v51  ;;  %v440_v51 = vpop.f32.mrf.mxu0 }
 0x164   : > { %2119 = vmatpush1.msra.mxu1 %v3538_v62  ;;  %2094 = vmatmul.mubr.f32.vlgmr.msra.gmra.mxu0 %v432_v8  ;;  %v4650_v62 = vld [vmem:[#allocation3_spill] sm:$0xff] }
 0x165   : > { %2120 = vmatprep.subr.mxu1 %v3547_v56  ;;  %2394 = vmatprep.subr.mxu0 %v2265_v32  ;;  %v2248_v8 = vrot.slane %v4650_v62, 1  ;;  %v2257_v56 = vsel %vm2199_vm6, %v2252_v31, %v2256_v48  ;;  %v2244_v32 = vrot.slane %v4652_v39, 1  ;;  %v4653_v48 = vld [vmem:[#allocation8_spill] sm:$0xff] }
 0x166   : > { %1823 = vmatprep.mubr.f32.mxu1 %v3908_v54  ;;  %2121 = vmatpush1.msra.mxu1 %v3559_v16  ;;  %v2255_v16 = vsel %vm2199_vm6, %v2250_v37, %v2254_v47  ;;  %v2242_v54 = vrot.slane %v2846_v13, 1  ;;  %v4655_v47 = vld [vmem:[#allocation9_spill] sm:$0xff] }
 0x167   : > { %2395 = vmatpush1.msra.mxu0 %v2263_v53  ;;  %1824 = vmatmul.mubr.f32.gmra.mxu1 %v3880_v61  ;;  %v2253_v61 = vsel %vm2199_vm6, %v2248_v8, %v2252_v31  ;;  %v2238_v53 = vrot.slane %v4653_v48, 1  ;;  %v4657_v31 = vld [vmem:[#allocation10_spill] sm:$0xff] }
 0x168   : > { %2122 = vmatprep.subr.mxu1 %v3566_v57  ;;  %2396 = vmatprep.subr.mxu0 %v2261_v52  ;;  %v2251_v57 = vsel %vm2199_vm6, %v2246_v21, %v2250_v37  ;;  %v4654_v52 = vld [vmem:[#allocation57_spill] sm:$0xff]  ;;  %v2234_v19 = vrot.slane %v4657_v31, 1  ;;  %v2245_v37 = vsel %vm2199_vm6, %v2240_v28, %v2244_v32 }
 0x169   : > { %2099 = vmatprep.mubr.f32.mxu0 %v440_v51  ;;  %2123 = vmatpush1.msra.mxu1 %v3572_v30  ;;  %v2249_v30 = vsel %vm2199_vm6, %v2244_v32, %v2248_v8  ;;  %v2236_v51 = vrot.slane %v4655_v47, 1  ;;  %v2243_v8 = vsel %vm2199_vm6, %v2238_v53, %v2242_v54 }
 0x16a   : > { %2397 = vmatpush1.msra.mxu0 %v2259_v33  ;;  %2124 = vmatprep.subr.mxu1 %v3576_v22  ;;  %v4656_v33 = vld [vmem:[#allocation58_spill] sm:$0xff]  ;;  %v2247_v22 = vsel %vm2199_vm6, %v2242_v54, %v2246_v21  ;;  %v2239_v32 = vsel %vm2199_vm6, %v2234_v19, %v2238_v53 }
 0x16b   : > { %2100 = vmatmul.mubr.f32.gmra.mxu0 %v438_v1  ;;  %2398 = vmatprep.subr.mxu0 %v2257_v56  ;;  %v4658_v1 = vld [vmem:[#allocation59_spill] sm:$0xff]  ;;  %v2241_v21 = vsel %vm2199_vm6, %v2236_v51, %v2240_v28 }
 0x16c   : > { %2125 = vmatpush1.msra.mxu1 %v4654_v52  ;;  %2399 = vmatpush1.msra.mxu0 %v2255_v16  ;;  %v4659_v56 = vld [vmem:[#allocation11_spill] sm:$0xff]  ;;  %v4660_v52 = vld [vmem:[#allocation60_spill] sm:$0xff] }
 0x16d   : > { %2126 = vmatprep.subr.mxu1 %v4656_v33  ;;  %2400 = vmatprep.subr.mxu0 %v2253_v61  ;;  %v2232_v48 = vrot.slane %v4659_v56, 1  ;;  %v4661_v16 = vld [vmem:[#allocation12_spill] sm:$0xff]  ;;  %v4662_v33 = vld [vmem:[#allocation61_spill] sm:$0xff] }
 0x16e   : > { %2127 = vmatpush1.msra.mxu1 %v4658_v1  ;;  %2401 = vmatpush1.msra.mxu0 %v2251_v57  ;;  %v2230_v47 = vrot.slane %v4661_v16, 1  ;;  %v4663_v61 = vld [vmem:[#allocation13_spill] sm:$0xff]  ;;  %v4664_v1 = vld [vmem:[#allocation62_spill] sm:$0xff] }
 0x16f   : > { %2128 = vmatprep.subr.mxu1 %v4660_v52  ;;  %2402 = vmatprep.subr.mxu0 %v2249_v30  ;;  %v2228_v31 = vrot.slane %v4663_v61, 1  ;;  %v4665_v57 = vld [vmem:[#allocation14_spill] sm:$0xff]  ;;  %v4666_v52 = vld [vmem:[#allocation63_spill] sm:$0xff]  ;;  %v2237_v54 = vsel %vm2199_vm6, %v2232_v48, %v2236_v51 }
 0x170   : > { %2129 = vmatpush1.msra.mxu1 %v4662_v33  ;;  %2403 = vmatpush1.msra.mxu0 %v2247_v22  ;;  %v2226_v56 = vrot.slane %v4665_v57, 1  ;;  %v4667_v30 = vld [vmem:[#allocation15_spill] sm:$0xff]  ;;  %v4668_v33 = vld [vmem:[#allocation64_spill] sm:$0xff]  ;;  %v2235_v28 = vsel %vm2199_vm6, %v2230_v47, %v2234_v19  ;;  %v479_v19 = vld [vmem:[%s4301_s2] sm:$0xff] }
 0x171   : > { %2130 = vmatprep.subr.mxu1 %v4664_v1  ;;  %2404 = vmatprep.subr.mxu0 %v2245_v37  ;;  %v2224_v16 = vrot.slane %v4667_v30, 1  ;;  %v4669_v22 = vld [vmem:[#allocation16_spill] sm:$0xff]  ;;  %v4670_v1 = vld [vmem:[#allocation65_spill] sm:$0xff]  ;;  %v2233_v53 = vsel %vm2199_vm6, %v2228_v31, %v2232_v48 }
 0x172   : > { %2131 = vmatpush1.msra.mxu1 %v4666_v52  ;;  %2405 = vmatpush1.msra.mxu0 %v2243_v8  ;;  %v2222_v61 = vrot.slane %v4669_v22, 1  ;;  %v4671_v37 = vld [vmem:[#allocation17_spill] sm:$0xff]  ;;  %v4672_v52 = vld [vmem:[#allocation66_spill] sm:$0xff]  ;;  %v2231_v51 = vsel %vm2199_vm6, %v2226_v56, %v2230_v47 }
 0x173   : > { %2132 = vmatprep.subr.mxu1 %v4668_v33  ;;  %2406 = vmatprep.subr.mxu0 %v2241_v21  ;;  %v2220_v57 = vrot.slane %v4671_v37, 1  ;;  %v4673_v8 = vld [vmem:[#allocation18_spill] sm:$0xff]  ;;  %v4674_v21 = vld [vmem:[#allocation67_spill] sm:$0xff]  ;;  %v4678_v37 = vld [vmem:[#allocation69_spill] sm:$0xff] }
 0x174   : > { %2133 = vmatpush1.msra.mxu1 %v4670_v1  ;;  %2407 = vmatpush1.msra.mxu0 %v2239_v32  ;;  %v2218_v30 = vrot.slane %v4673_v8, 1  ;;  %v2229_v32 = vsel %vm2199_vm6, %v2224_v16, %v2228_v31  ;;  %v4675_v33 = vld [vmem:[#allocation19_spill] sm:$0xff]  ;;  %v4676_v1 = vld [vmem:[#allocation68_spill] sm:$0xff]  ;;  %v4679_v22 = vld [vmem:[#allocation21_spill] sm:$0xff] }
 0x175   : > { %2134 = vmatprep.subr.mxu1 %v4672_v52  ;;  %2408 = vmatprep.subr.mxu0 %v2237_v54  ;;  %v2216_v48 = vrot.slane %v4675_v33, 1  ;;  %v2227_v54 = vsel %vm2199_vm6, %v2222_v61, %v2226_v56  ;;  %v4677_v52 = vld [vmem:[#allocation20_spill] sm:$0xff]  ;;  %v2225_v8 = vsel %vm2199_vm6, %v2220_v57, %v2224_v16  ;;  %v2212_v13 = vrot.slane %v4679_v22, 1  ;;  %v4684_v56 = vld [vmem:[#allocation71_spill] sm:$0xff] }
 0x176   : > { %2135 = vmatpush1.msra.mxu1 %v4674_v21  ;;  %2409 = vmatpush1.msra.mxu0 %v2235_v28  ;;  %v2214_v47 = vrot.slane %v4677_v52, 1  ;;  %v4049_v21 = vunpack.c.h.bf16 %v479_v19  ;;  %v4681_v28 = vld [vmem:[#allocation70_spill] sm:$0xff]  ;;  %v2223_v31 = vsel %vm2199_vm6, %v2218_v30, %v2222_v61  ;;  %v4054_v33 = vunpack.c.l.bf16 %v479_v19  ;;  %v4686_v52 = vld [vmem:[#allocation72_spill] sm:$0xff] }
 0x177   : > { %2136 = vmatprep.subr.mxu1 %v4676_v1  ;;  %2410 = vmatprep.subr.mxu0 %v2233_v53  ;;  %v4682_v1 = vld [vmem:[#allocation22_spill] sm:$0xff]  ;;  %v2217_v61 = vsel %vm2199_vm6, %v2212_v13, %v2216_v48 }
 0x178   : > { %2137 = vmatpush1.msra.mxu1 %v4678_v37  ;;  %2411 = vmatpush1.msra.mxu0 %v2231_v51  ;;  %4680 = vst [vmem:[#allocation2_spill] sm:$0xff] %v4049_v21  ;;  %v2210_v53 = vrot.slane %v4682_v1, 1  ;;  %4683 = vst [vmem:[#allocation3_spill] sm:$0xff] %v4054_v33  ;;  %v2221_v37 = vsel %vm2199_vm6, %v2216_v48, %v2220_v57  ;;  %v4685_v51 = vld [vmem:[#allocation23_spill] sm:$0xff]  ;;  %v2219_v22 = vsel %vm2199_vm6, %v2214_v47, %v2218_v30 }
 0x179   : > { %2138 = vmatprep.subr.mxu1 %v4681_v28  ;;  %2412 = vmatprep.subr.mxu0 %v2229_v32  ;;  %v2208_v16 = vrot.slane %v4685_v51, 1  ;;  %v4687_v28 = vld [vmem:[#allocation24_spill] sm:$0xff]  ;;  %v2114_v19 = vrot.slane %v4049_v21, 2  ;;  %v2201_v30 = vrot.slane %v4610_v63, 1  ;;  %v2203_v48 = vrot.slane %v4049_v21, 1  ;;  %v4693_v51 = vld [vmem:[#allocation25_spill] sm:$0xff] }
 0x17a   : > { %2139 = vmatpush1.msra.mxu1 %v4684_v56  ;;  %2413 = vmatpush1.msra.mxu0 %v2227_v54  ;;  %v2206_v32 = vrot.slane %v4687_v28, 1  ;;  %v2204_v54 = vrot.slane %v4607_v27, 1  ;;  %v4688_v56 = vld [vmem:[#allocation56_spill] sm:$0xff]  ;;  %v2215_v57 = vsel %vm2199_vm6, %v2210_v53, %v2214_v47  ;;  %v4690_v47 = vrot.slane %v4607_v27, 2  ;;  %v4692_v28 = vld [vmem:[#allocation29_spill] sm:$0xff] }
 0x17b   : > { %2140 = vmatprep.subr.mxu1 %v4686_v52  ;;  %2414 = vmatprep.subr.mxu0 %v2225_v8  ;;  %v2112_v8 = vrot.slane %v4054_v33, 2  ;;  %v4689_v52 = vld [vmem:[#allocation73_spill] sm:$0xff]  ;;  %v2328_v21 = vrot.slane %v4692_v28, 1 }
 0x17c   : > { %2141 = vmatpush1.msra.mxu1 %v3694_v49  ;;  %2415 = vmatpush1.msra.mxu0 %v2223_v31  ;;  %v2213_v49 = vsel %vm2199_vm6, %v2208_v16, %v2212_v13  ;;  %v2211_v31 = vsel %vm2199_vm6, %v2206_v32, %v2210_v53 }
 0x17d   : > { %2142 = vmatprep.subr.mxu1 %v4688_v56  ;;  %2416 = vmatprep.subr.mxu0 %v2221_v37  ;;  %v2200_v37 = vrot.slane %v4054_v33, 1  ;;  %v2115_v56 = vsel %vm1834_vm4, %v2114_v19, %v4690_v47  ;;  %v4696_v33 = vld [vmem:[#allocation30_spill] sm:$0xff]  ;;  %v4697_v19 = vld [vmem:[#allocation27_spill] sm:$0xff]  ;;  %v4698_v47 = vld [vmem:[#allocation33_spill] sm:$0xff] }
 0x17e   : > { %2143 = vmatpush1.msra.mxu1 %v4689_v52  ;;  %2417 = vmatpush1.msra.mxu0 %v2219_v22  ;;  %v2209_v22 = vsel %vm2199_vm6, %v2204_v54, %v2208_v16  ;;  %v4691_v52 = vld [vmem:[#allocation31_spill] sm:$0xff]  ;;  %v2326_v27 = vrot.slane %v4696_v33, 1  ;;  %v2205_v16 = vsel %vm2199_vm6, %v2203_v48, %v2204_v54  ;;  %v2320_v28 = vrot.slane %v4698_v47, 1  ;;  %v4701_v54 = vld [vmem:[#allocation36_spill] sm:$0xff] }
 0x17f   : > { %2144 = vmatprep.subr.mxu1 %v3714_v36  ;;  %2418 = vmatprep.subr.mxu0 %v2217_v61  ;;  %v2324_v13 = vrot.slane %v4691_v52, 1  ;;  %v4694_v36 = vrot.slane %v4610_v63, 2  ;;  %v4695_v61 = vld [vmem:[#allocation32_spill] sm:$0xff]  ;;  %v2314_v48 = vrot.slane %v4701_v54, 1 }
 0x180   : > { %2145 = vmatpush1.msra.mxu1 %v3726_v2  ;;  %2419 = vmatpush1.msra.mxu0 %v2215_v57  ;;  %v2207_v2 = vsel %vm2199_vm6, %v2201_v30, %v2206_v32  ;;  %v2322_v57 = vrot.slane %v4695_v61, 1 }
 0x181   : > { %2146 = vmatprep.subr.mxu1 %v4693_v51  ;;  %2420 = vmatprep.subr.mxu0 %v2213_v49  ;;  %v2113_v53 = vsel %vm1834_vm4, %v2112_v8, %v4694_v36  ;;  %v2202_v51 = vsel %vm2199_vm6, %v2200_v37, %v2201_v30  ;;  %v4699_v49 = vld [vmem:[#allocation34_spill] sm:$0xff]  ;;  %v2329_v32 = vsel %vm2199_vm6, %v2324_v13, %v2328_v21  ;;  %v4700_v8 = vld [vmem:[#allocation35_spill] sm:$0xff] }
 0x182   : > { %2147 = vmatpush1.msra.mxu1 %v4697_v19  ;;  %2421 = vmatpush1.msra.mxu0 %v2211_v31  ;;  %v2318_v52 = vrot.slane %v4699_v49, 1  ;;  %v2316_v36 = vrot.slane %v4700_v8, 1  ;;  %v2327_v33 = vsel %vm2199_vm6, %v2322_v57, %v2326_v27  ;;  %v2325_v30 = vsel %vm2199_vm6, %v2320_v28, %v2324_v13  ;;  %v4702_v31 = vld [vmem:[#allocation37_spill] sm:$0xff] }
 0x183   : > { %2148 = vmatprep.subr.mxu1 %v2115_v56  ;;  %2422 = vmatprep.subr.mxu0 %v2209_v22  ;;  %v2312_v37 = vrot.slane %v4702_v31, 1  ;;  %v4703_v56 = vld [vmem:[#allocation74_spill] sm:$0xff] }
 0x184   : > { %2149 = vmatpush1.msra.mxu1 %v2113_v53  ;;  %2423 = vmatpush1.msra.mxu0 %v2207_v2  ;;  %v2323_v21 = vsel %vm2199_vm6, %v2318_v52, %v2322_v57  ;;  %v4704_v22 = vld [vmem:[#allocation38_spill] sm:$0xff]  ;;  %v4705_v2 = vld [vmem:[#allocation75_spill] sm:$0xff]  ;;  %v2321_v27 = vsel %vm2199_vm6, %v2316_v36, %v2320_v28  ;;  %v2319_v13 = vsel %vm2199_vm6, %v2314_v48, %v2318_v52 }
 0x185   : > { %2150 = vmatprep.subr.mxu1 %v3762_v14  ;;  %2424 = vmatprep.subr.mxu0 %v2205_v16  ;;  %v2310_v53 = vrot.slane %v4704_v22, 1  ;;  %v4106_v14 = vpop.f32.mrf.mxu0  ;;  %v4707_v16 = vld [vmem:[#allocation76_spill] sm:$0xff]  ;;  %v2317_v57 = vsel %vm2199_vm6, %v2312_v37, %v2316_v36 }
 0x186   : > { %2151 = vmatpush2.msra.mxu1 %v3768_v15  ;;  %2425 = vmatpush1.msra.mxu0 %v2202_v51  ;;  %v4706_v15 = vld [vmem:[#allocation39_spill] sm:$0xff]  ;;  %v4708_v51 = vld [vmem:[#allocation40_spill] sm:$0xff] }
 0x187   : > { %2152 = vmatprep.subr.mxu1 %v4703_v56  ;;  %2426 = vmatprep.subr.mxu0 %v2329_v32  ;;  %v2308_v19 = vrot.slane %v4706_v15, 1  ;;  %v2306_v32 = vrot.slane %v4708_v51, 1  ;;  %v4709_v56 = vld [vmem:[#allocation41_spill] sm:$0xff]  ;;  %v2315_v28 = vsel %vm2199_vm6, %v2310_v53, %v2314_v48 }
 0x188   : > { %2153 = vmatpush2.msra.mxu1 %v4705_v2  ;;  %2427 = vmatpush2.msra.mxu0 %v2327_v33  ;;  %v2304_v22 = vrot.slane %v4709_v56, 1  ;;  %v4710_v2 = vld [vmem:[#allocation77_spill] sm:$0xff]  ;;  %v4711_v33 = vld [vmem:[#allocation42_spill] sm:$0xff] }
 0x189   : > { %2154 = vmatprep.subr.mxu1 %v4707_v16  ;;  %2428 = vmatprep.subr.mxu0 %v2325_v30  ;;  %v2302_v15 = vrot.slane %v4711_v33, 1  ;;  %v4120_v16 = vpop.f32.mrf.mxu0  ;;  %v2313_v52 = vsel %vm2199_vm6, %v2308_v19, %v2312_v37  ;;  %v2311_v36 = vsel %vm2199_vm6, %v2306_v32, %v2310_v53  ;;  %v4715_v33 = vld [vmem:[#allocation45_spill] sm:$0xff] }
 0x18a   : > { %2155 = vmatpush2.msra.mxu1 %v3795_v55  ;;  %2429 = vmatpush2.msra.mxu0 %v2323_v21  ;;  %v4712_v55 = vld [vmem:[#allocation43_spill] sm:$0xff]  ;;  %v4713_v21 = vld [vmem:[#allocation78_spill] sm:$0xff]  ;;  %v2309_v48 = vsel %vm2199_vm6, %v2304_v22, %v2308_v19  ;;  %v2296_v56 = vrot.slane %v4715_v33, 1 }
 0x18b   : > { %2156 = vmatprep.subr.mxu1 %v4710_v2  ;;  %2430 = vmatprep.subr.mxu0 %v2321_v27  ;;  %v2300_v30 = vrot.slane %v4712_v55, 1  ;;  %v4714_v2 = vld [vmem:[#allocation44_spill] sm:$0xff]  ;;  %v2307_v37 = vsel %vm2199_vm6, %v2302_v15, %v2306_v32 }
 0x18c   : > { %2157 = vmatpush2.msra.mxu1 %v3809_v29  ;;  %2431 = vmatpush2.msra.mxu0 %v2319_v13  ;;  %v2298_v27 = vrot.slane %v4714_v2, 1  ;;  %v4716_v29 = vld [vmem:[#allocation79_spill] sm:$0xff]  ;;  %v4717_v13 = vld [vmem:[#allocation46_spill] sm:$0xff] }
 0x18d   : > { %2158 = vmatprep.subr.mxu1 %v4713_v21  ;;  %2432 = vmatprep.subr.mxu0 %v2317_v57  ;;  %v2294_v55 = vrot.slane %v4717_v13, 1  ;;  %v4134_v21 = vpop.f32.mrf.mxu0  ;;  %v2305_v53 = vsel %vm2199_vm6, %v2300_v30, %v2304_v22  ;;  %v2301_v32 = vsel %vm2199_vm6, %v2296_v56, %v2300_v30  ;;  %v4721_v13 = vld [vmem:[#allocation49_spill] sm:$0xff] }
 0x18e   : > { %2159 = vmatpush2.msra.mxu1 %v3825_v23  ;;  %2433 = vmatpush2.msra.mxu0 %v2315_v28  ;;  %v4718_v23 = vld [vmem:[#allocation47_spill] sm:$0xff]  ;;  %v4719_v28 = vld [vmem:[#allocation80_spill] sm:$0xff]  ;;  %v2303_v19 = vsel %vm2199_vm6, %v2298_v27, %v2302_v15  ;;  %v2288_v33 = vrot.slane %v4721_v13, 1 }
 0x18f   : > { %2160 = vmatprep.subr.mxu1 %v4716_v29  ;;  %2434 = vmatprep.subr.mxu0 %v2313_v52  ;;  %v2292_v57 = vrot.slane %v4718_v23, 1  ;;  %v4720_v29 = vld [vmem:[#allocation48_spill] sm:$0xff]  ;;  %v2299_v22 = vsel %vm2199_vm6, %v2294_v55, %v2298_v27 }
 0x190   : > { %2161 = vmatpush2.msra.mxu1 %v3839_v45  ;;  %2435 = vmatpush2.msra.mxu0 %v2311_v36  ;;  %v2290_v52 = vrot.slane %v4720_v29, 1  ;;  %v4722_v45 = vld [vmem:[#allocation81_spill] sm:$0xff]  ;;  %v4723_v36 = vld [vmem:[#allocation50_spill] sm:$0xff] }
 0x191   : > { %2162 = vmatprep.subr.mxu1 %v4719_v28  ;;  %2436 = vmatprep.subr.mxu0 %v2309_v48  ;;  %v2286_v23 = vrot.slane %v4723_v36, 1  ;;  %v4148_v28 = vpop.f32.mrf.mxu0  ;;  %v2297_v15 = vsel %vm2199_vm6, %v2292_v57, %v2296_v56  ;;  %v2293_v27 = vsel %vm2199_vm6, %v2288_v33, %v2292_v57  ;;  %v4727_v36 = vld [vmem:[#allocation53_spill] sm:$0xff]  ;;  %v4728_v56 = vld [vmem:[#allocation54_spill] sm:$0xff] }
 0x192   : > { %2163 = vmatpush2.msra.mxu1 %v3855_v40  ;;  %2437 = vmatpush2.msra.mxu0 %v2307_v37  ;;  %v4724_v40 = vld [vmem:[#allocation51_spill] sm:$0xff]  ;;  %v2295_v30 = vsel %vm2199_vm6, %v2290_v52, %v2294_v55  ;;  %v4725_v37 = vld [vmem:[#allocation52_spill] sm:$0xff]  ;;  %v2280_v13 = vrot.slane %v4727_v36, 1 }
 0x193   : > { %2164 = vmatprep.subr.mxu1 %v4722_v45  ;;  %2438 = vmatprep.subr.mxu0 %v2305_v53  ;;  %v2284_v48 = vrot.slane %v4724_v40, 1  ;;  %v2282_v53 = vrot.slane %v4725_v37, 1  ;;  %v4726_v45 = vld [vmem:[#allocation82_spill] sm:$0xff] }
 0x194   : > { %2165 = vmatpush2.msra.mxu1 %v3869_v46  ;;  %2439 = vmatpush2.msra.mxu0 %v2303_v19  ;;  %v2291_v46 = vsel %vm2199_vm6, %v2286_v23, %v2290_v52  ;;  %v2278_v19 = vrot.slane %v4728_v56, 1 }
 0x195   : > { %2166 = vmatprep.subr.mxu1 %v3876_v59  ;;  %2440 = vmatprep.subr.mxu0 %v2301_v32  ;;  %v456_v59 = vpop.f32.mrf.mxu0  ;;  %v2289_v55 = vsel %vm2199_vm6, %v2284_v48, %v2288_v33  ;;  %v2276_v32 = vrot.slane %v3275_v44, 1  ;;  %v2287_v57 = vsel %vm2199_vm6, %v2282_v53, %v2286_v23  ;;  %v2285_v52 = vsel %vm2199_vm6, %v2280_v13, %v2284_v48 }
 0x196   : > { %2167 = vmatpush2.msra.mxu1 %v4726_v45  ;;  %2441 = vmatpush2.msra.mxu0 %v2299_v22  ;;  %v2272_v22 = vrot.slane %v2733_v4, 1  ;;  %v2270_v33 = vrot.slane %v2737_v6, 1  ;;  %v2268_v48 = vrot.slane %v2731_v3, 1  ;;  %v4730_v45 = vld [vmem:[#allocation26_spill] sm:$0xff] }
 0x197   : > { %2168 = vmatprep.subr.mxu1 %v3892_v18  ;;  %2442 = vmatprep.subr.mxu0 %v2297_v15  ;;  %v2274_v18 = vrot.slane %v3285_v41, 1  ;;  %v4729_v15 = vld [vmem:[#allocation83_spill] sm:$0xff]  ;;  %v2281_v23 = vsel %vm2199_vm6, %v2276_v32, %v2280_v13 }
 0x198   : > { %2169 = vmatpush2.msra.mxu1 %v3899_v50  ;;  %2443 = vmatpush2.msra.mxu0 %v2295_v30  ;;  %v2283_v50 = vsel %vm2199_vm6, %v2278_v19, %v2282_v53  ;;  %v2266_v30 = vrot.slane %v2735_v5, 1 }
 0x199   : > { %2170 = vmatprep.subr.mxu1 %v3906_v17  ;;  %2444 = vmatprep.subr.mxu0 %v2293_v27  ;;  %v458_v17 = vpop.f32.mrf.mxu0  ;;  %v2275_v53 = vsel %vm2199_vm6, %v2270_v33, %v2274_v18 }
 0x19a   : > { %2171 = vmatpush2.msra.mxu1 %v3915_v7  ;;  %2445 = vmatpush2.msra.mxu0 %v2291_v46  ;;  %v2279_v7 = vsel %vm2199_vm6, %v2274_v18, %v2278_v19  ;;  %v4732_v46 = vld [vmem:[#allocation28_spill] sm:$0xff]  ;;  %v4750_v18 = vld [vmem:[#allocation23_spill] sm:$0xff] }
 0x19b   : > { %2172 = vmatprep.subr.mxu1 %v3922_v43  ;;  %2446 = vmatprep.subr.mxu0 %v2289_v55  ;;  %v2277_v43 = vsel %vm2199_vm6, %v2272_v22, %v2276_v32  ;;  %v462_v13 = vpop.f32.mrf.mxu0  ;;  %v4747_v55 = vld [vmem:[#allocation19_spill] sm:$0xff]  ;;  %v4748_v32 = vld [vmem:[#allocation20_spill] sm:$0xff] }
 0x19c   : > { %2173 = vmatpush2.msra.mxu1 %v4729_v15  ;;  %2447 = vmatpush2.msra.mxu0 %v2287_v57  ;;  %v4749_v57 = vld [vmem:[#allocation21_spill] sm:$0xff] }
 0x19d   : > { %2174 = vmatprep.subr.mxu1 %v3933_v34  ;;  %2448 = vmatprep.subr.mxu0 %v2285_v52  ;;  %v2273_v34 = vsel %vm2199_vm6, %v2268_v48, %v2272_v22  ;;  %v4751_v52 = vld [vmem:[#allocation24_spill] sm:$0xff]  ;;  %v4752_v22 = vld [vmem:[#allocation55_spill] sm:$0xff]  ;;  %v4758_v15 = vld [vmem:[#allocation41_spill] sm:$0xff] }
 0x19e   : > { %2175 = vmatpush2.msra.mxu1 %v3939_v24  ;;  %2449 = vmatpush2.msra.mxu0 %v2283_v50  ;;  %v2271_v24 = vsel %vm2199_vm6, %v2266_v30, %v2270_v33  ;;  %v4753_v50 = vld [vmem:[#allocation2_spill] sm:$0xff]  ;;  %v4754_v33 = vld [vmem:[#allocation3_spill] sm:$0xff] }
 0x19f   : > { %2176 = vmatprep.subr.mxu1 %v3947_v0  ;;  %2450 = vmatprep.subr.mxu0 %v2281_v23  ;;  %v4731_v0 = vrot.slane %v2748_v9, 1  ;;  %v4759_v23 = vld [vmem:[#allocation42_spill] sm:$0xff] }
 0x1a0   : > { %2177 = vmatpush2.msra.mxu1 %v3954_v20  ;;  %2451 = vmatpush2.msra.mxu0 %v2279_v7  ;;  %v464_v20 = vpop.f32.mrf.mxu0 }
 0x1a1   : > { %2178 = vmatprep.subr.mxu1 %v3962_v42  ;;  %2452 = vmatprep.subr.mxu0 %v2277_v43  ;;  %v2269_v27 = vsel %vm2199_vm6, %v4731_v0, %v2268_v48  ;;  %v4733_v42 = vrot.slane %v2750_v10, 1 }
 0x1a2   : > { %2179 = vmatpush2.msra.mxu1 %v3968_v25  ;;  %2453 = vmatpush2.msra.mxu0 %v2275_v53  ;;  %v4200_v25 = vpop.f32.mrf.mxu0 }
 0x1a3   : > { %2180 = vmatprep.subr.mxu1 %v4730_v45  ;;  %2182 = vmatprep.mubr.f32.mxu1 %v4120_v16  ;;  %v2267_v19 = vsel %vm2199_vm6, %v4733_v42, %v2266_v30  ;;  %v4739_v16 = vld [vmem:[#allocation11_spill] sm:$0xff] }
 0x1a4   : > { %2454 = vmatprep.subr.mxu0 %v2273_v34  ;;  %2181 = vmatpush2.msra.mxu1 %v4732_v46 }
 0x1a5   : > { %2455 = vmatpush2.msra.mxu0 %v2271_v24  ;;  %2183 = vmatmul.mubr.f32.vlgmr.msra.gmra.mxu1 %v4106_v14  ;;  %v470_v14 = vpop.f32.mrf.mxu0 }
 0x1a6   : > { %2456 = vmatprep.subr.mxu0 %v2269_v27  ;;  %2475 = vmatprep.subr.mxu1 %v2752_v11  ;;  %v4734_v11 = vld [vmem:[#allocation6_spill] sm:$0xff] }
 0x1a7   : > { %2457 = vmatpush2.msra.mxu0 %v2267_v19  ;;  %2458 = vmatprep.mubr.f32.mxu0 %v458_v17  ;;  %v4755_v17 = vld [vmem:[#allocation31_spill] sm:$0xff] }
 0x1a8   : > { %2476 = vmatpush1.msra.mxu1 %v2754_v12  ;;  %2459 = vmatmul.mubr.f32.vlgmr.msra.gmra.mxu0 %v456_v59  ;;  %v4735_v12 = vld [vmem:[#allocation7_spill] sm:$0xff]  ;;  %v4746_v59 = vld [vmem:[#allocation18_spill] sm:$0xff] }
 0x1a9   : > { %2477 = vmatprep.subr.mxu1 %v2773_v26  ;;  %2188 = vmatprep.mubr.f32.mxu1 %v4148_v28  ;;  %v4736_v26 = vld [vmem:[#allocation8_spill] sm:$0xff]  ;;  %v4745_v28 = vld [vmem:[#allocation17_spill] sm:$0xff] }
 0x1aa   : > { %2478 = vmatpush1.msra.mxu1 %v2789_v35  ;;  %2464 = vmatprep.mubr.f32.mxu0 %v464_v20  ;;  %v4737_v35 = vld [vmem:[#allocation9_spill] sm:$0xff] }
 0x1ab   : > { %2189 = vmatmul.mubr.f32.gmra.mxu1 %v4134_v21  ;;  %2479 = vmatprep.subr.mxu1 %v2794_v38  ;;  %v4738_v38 = vld [vmem:[#allocation10_spill] sm:$0xff] }
 0x1ac   : > { %2480 = vmatpush1.msra.mxu1 %v4649_v58  ;;  %2465 = vmatmul.mubr.f32.gmra.mxu0 %v462_v13  ;;  %v4740_v58 = vld [vmem:[#allocation12_spill] sm:$0xff]  ;;  %v4742_v21 = vld [vmem:[#allocation14_spill] sm:$0xff] }
 0x1ad   : > { %2481 = vmatprep.subr.mxu1 %v4650_v62  ;;  %2539 = vmatprep.mubr.f32.mxu1 %v470_v14  ;;  %v4741_v62 = vld [vmem:[#allocation13_spill] sm:$0xff] }
 0x1ae   : > { %2482 = vmatpush1.msra.mxu1 %v4651_v60  ;;  %v4743_v60 = vld [vmem:[#allocation15_spill] sm:$0xff] }
 0x1af   : > { %2483 = vmatprep.subr.mxu1 %v4652_v39  ;;  %v4744_v39 = vld [vmem:[#allocation16_spill] sm:$0xff] }
 0x1b0   : > { %2484 = vmatpush1.msra.mxu1 %v4734_v11 }
 0x1b1   : > { %2485 = vmatprep.subr.mxu1 %v4735_v12 }
 0x1b2   : > { %2486 = vmatpush1.msra.mxu1 %v4736_v26 }
 0x1b3   : > { %2487 = vmatprep.subr.mxu1 %v4737_v35 }
 0x1b4   : > { %2488 = vmatpush1.msra.mxu1 %v4738_v38 }
 0x1b5   : > { %2489 = vmatprep.subr.mxu1 %v4739_v16 }
 0x1b6   : > { %2490 = vmatpush1.msra.mxu1 %v4740_v58 }
 0x1b7   : > { %2491 = vmatprep.subr.mxu1 %v4741_v62 }
 0x1b8   : > { %2492 = vmatpush1.msra.mxu1 %v4742_v21 }
 0x1b9   : > { %2493 = vmatprep.subr.mxu1 %v4743_v60 }
 0x1ba   : > { %2494 = vmatpush1.msra.mxu1 %v4744_v39 }
 0x1bb   : > { %2495 = vmatprep.subr.mxu1 %v4745_v28 }
 0x1bc   : > { %2496 = vmatpush1.msra.mxu1 %v4746_v59 }
 0x1bd   : > { %2497 = vmatprep.subr.mxu1 %v4747_v55 }
 0x1be   : > { %2498 = vmatpush1.msra.mxu1 %v4748_v32 }
 0x1bf   : > { %2499 = vmatprep.subr.mxu1 %v4749_v57 }
 0x1c0   : > { %2500 = vmatpush1.msra.mxu1 %v4682_v1  ;;  %v4756_v1 = vld [vmem:[#allocation38_spill] sm:$0xff] }
 0x1c1   : > { %2501 = vmatprep.subr.mxu1 %v4750_v18 }
 0x1c2   : > { %2502 = vmatpush1.msra.mxu1 %v4751_v52 }
 0x1c3   : > { %2503 = vmatprep.subr.mxu1 %v4752_v22 }
 0x1c4   : > { %2504 = vmatpush1.msra.mxu1 %v4610_v63  ;;  %v4757_v63 = vld [vmem:[#allocation39_spill] sm:$0xff] }
 0x1c5   : > { %2505 = vmatprep.subr.mxu1 %v4753_v50 }
 0x1c6   : > { %2506 = vmatpush1.msra.mxu1 %v4754_v33 }
 0x1c7   : > { %2507 = vmatprep.subr.mxu1 %v4755_v17 }
 0x1c8   : > { %2508 = vmatpush2.msra.mxu1 %v4695_v61  ;;  %v4760_v61 = vld [vmem:[#allocation43_spill] sm:$0xff] }
 0x1c9   : > { %2509 = vmatprep.subr.mxu1 %v4698_v47  ;;  %v4761_v47 = vld [vmem:[#allocation45_spill] sm:$0xff] }
 0x1ca   : > { %2510 = vmatpush2.msra.mxu1 %v4699_v49  ;;  %v4762_v49 = vld [vmem:[#allocation46_spill] sm:$0xff] }
 0x1cb   : > { %2511 = vmatprep.subr.mxu1 %v4700_v8  ;;  %v4763_v8 = vld [vmem:[#allocation47_spill] sm:$0xff] }
 0x1cc   : > { %2512 = vmatpush2.msra.mxu1 %v4701_v54  ;;  %v4764_v54 = vld [vmem:[#allocation49_spill] sm:$0xff] }
 0x1cd   : > { %2513 = vmatprep.subr.mxu1 %v4702_v31  ;;  %v4765_v31 = vld [vmem:[#allocation50_spill] sm:$0xff] }
 0x1ce   : > { %2514 = vmatpush2.msra.mxu1 %v4756_v1 }
 0x1cf   : > { %2515 = vmatprep.subr.mxu1 %v4757_v63 }
 0x1d0   : > { %2516 = vmatpush2.msra.mxu1 %v4708_v51  ;;  %v474_v51 = vpop.f32.mrf.mxu0 }
 0x1d1   : > { %2517 = vmatprep.subr.mxu1 %v4758_v15 }
 0x1d2   : > { %2518 = vmatpush2.msra.mxu1 %v4759_v23 }
 0x1d3   : > { %2519 = vmatprep.subr.mxu1 %v4760_v61  ;;  %v2556_v61 = vld [vmem:[%s4302_s3] sm:$0xff] }
 0x1d4   : > { %2520 = vmatpush2.msra.mxu1 %v4714_v2  ;;  %v476_v2 = vpop.f32.mrf.mxu0 }
 0x1d5   : > { %2521 = vmatprep.subr.mxu1 %v4761_v47 }
 0x1d6   : > { %2522 = vmatpush2.msra.mxu1 %v4762_v49 }
 0x1d7   : > { %2523 = vmatprep.subr.mxu1 %v4763_v8 }
 0x1d8   : > { %2524 = vmatpush2.msra.mxu1 %v4720_v29 }
 0x1d9   : > { %2525 = vmatprep.subr.mxu1 %v4764_v54 }
 0x1da   : > { %2526 = vmatpush2.msra.mxu1 %v4765_v31  ;;  %v2564_v31 = vld [vmem:[%s4303_s4] sm:$0xff] }
 0x1db   : > { %2527 = vmatprep.subr.mxu1 %v4724_v40 }
 0x1dc   : > { %2528 = vmatpush2.msra.mxu1 %v4725_v37 }
 0x1dd   : > { %2529 = vmatprep.subr.mxu1 %v4727_v36 }
 0x1de   : > { %2530 = vmatpush2.msra.mxu1 %v4728_v56 }
 0x1df   : > { %2531 = vmatprep.subr.mxu1 %v3275_v44  ;;  %v911_v44 = vpop.f32.mrf.mxu1 }
 0x1e0   : > { %2532 = vmatpush2.msra.mxu1 %v3285_v41  ;;  %v1183_v41 = vpop.f32.mrf.mxu0 }
 0x1e1   : > { %2533 = vmatprep.subr.mxu1 %v2733_v4  ;;  %v913_v29 = vpop.f32.mrf.mxu1  ;;  %v1184_v45 = vadd.f32 %v1183_v41, %v911_v44 }
 0x1e2   : > { %2534 = vmatpush2.msra.mxu1 %v2737_v6  ;;  %v1185_v4 = vpop.f32.mrf.mxu0 }
 0x1e3   : > { %2535 = vmatprep.subr.mxu1 %v2731_v3  ;;  %v917_v36 = vpop.f32.mrf.mxu1  ;;  %v1186_v0 = vadd.f32 %v1185_v4, %v913_v29  ;;  %v2565_v4 = vld [vmem:[%s4303_s4 + $0x8] sm:$0xff] }
 0x1e4   : > { %2536 = vmatpush2.msra.mxu1 %v2735_v5  ;;  %v1189_v6 = vpop.f32.mrf.mxu0 }
 0x1e5   : > { %2537 = vmatprep.subr.mxu1 %v2748_v9  ;;  %v919_v40 = vpop.f32.mrf.mxu1  ;;  %v1190_v42 = vadd.f32 %v1189_v6, %v917_v36  ;;  %v2558_v6 = vld [vmem:[%s4302_s3 + $0x10] sm:$0xff] }
 0x1e6   : > { %2538 = vmatpush2.msra.mxu1 %v2750_v10  ;;  %v1191_v3 = vpop.f32.mrf.mxu0 }
 0x1e7   : > { %2540 = vmatmul.mubr.f32.vlgmr.msra.gmra.mxu1 %v4200_v25  ;;  %v1454_v37 = vpop.f32.mrf.mxu1  ;;  %v1192_v14 = vadd.f32 %v1191_v3, %v919_v40 }
 0x1e8   : > { %2545 = vmatprep.mubr.f32.mxu1 %v476_v2  ;;  %v1543_v5 = vpop.f32.mrf.mxu0  ;;  %v1465_v27 = vadd.f32 %v1454_v37, %v1184_v45  ;;  %v2557_v2 = vld [vmem:[%s4302_s3 + $0x8] sm:$0xff] }
 0x1e9   : > { %v1456_v56 = vpop.f32.mrf.mxu1 }
 0x1ea   : > { %v1545_v9 = vpop.f32.mrf.mxu0  ;;  %v1466_v19 = vadd.f32 %v1456_v56, %v1186_v0  ;;  %v1554_v11 = vadd.f32 %v1543_v5, %v1465_v27  ;;  %v2566_v5 = vld [vmem:[%s4303_s4 + $0x10] sm:$0xff] }
 0x1eb   : > { %2546 = vmatmul.mubr.f32.gmra.mxu1 %v474_v51  ;;  %v1460_v7 = vpop.f32.mrf.mxu1 }
 0x1ec   : > { %v1549_v10 = vpop.f32.mrf.mxu0  ;;  %v1467_v12 = vadd.f32 %v1460_v7, %v1190_v42  ;;  %v1555_v35 = vadd.f32 %v1545_v9, %v1466_v19  ;;  %v2559_v9 = vld [vmem:[%s4302_s3 + $0x18] sm:$0xff] }
 0x1ed   : > { %v1462_v48 = vpop.f32.mrf.mxu1 }
 0x1ee   : > { %v1551_v30 = vpop.f32.mrf.mxu0  ;;  %v1468_v38 = vadd.f32 %v1462_v48, %v1192_v14  ;;  %v1556_v21 = vadd.f32 %v1549_v10, %v1467_v12 }
 0x1f0   : > { %v1557_v39 = vadd.f32 %v1551_v30, %v1468_v38  ;;  %v2567_v30 = vld [vmem:[%s4303_s4 + $0x18] sm:$0xff] }
 0x221   : > { %v1819_v43 = vpop.f32.mrf.mxu1 }
 0x222   : > { %v1830_v16 = vadd.f32 %v1819_v43, %v1554_v11 }
 0x223   : > { %v1821_v53 = vpop.f32.mrf.mxu1 }
 0x224   : > { %v2095_v13 = vpop.f32.mrf.mxu0  ;;  %v1831_v60 = vadd.f32 %v1821_v53, %v1555_v35 }
 0x225   : > { %v2106_v28 = vadd.f32 %v2095_v13, %v1830_v16 }
 0x226   : > { %v2097_v24 = vpop.f32.mrf.mxu0 }
 0x227   : > { %v1825_v34 = vpop.f32.mrf.mxu1  ;;  %v2107_v57 = vadd.f32 %v2097_v24, %v1831_v60 }
 0x228   : > { %v1832_v59 = vadd.f32 %v1825_v34, %v1556_v21 }
 0x229   : > { %v1827_v20 = vpop.f32.mrf.mxu1 }
 0x22a   : > { %v1833_v18 = vadd.f32 %v1827_v20, %v1557_v39 }
 0x22b   : > { %v2101_v46 = vpop.f32.mrf.mxu0 }
 0x22c   : > { %v2108_v22 = vadd.f32 %v2101_v46, %v1832_v59 }
 0x22d   : > { %v2103_v26 = vpop.f32.mrf.mxu0 }
 0x22e   : > { %v2109_v1 = vadd.f32 %v2103_v26, %v1833_v18 }
 0x265   : > { %v2184_v25 = vpop.f32.mrf.mxu1 }
 0x266   : > { %v2195_v52 = vadd.f32 %v2184_v25, %v2106_v28 }
 0x267   : > { %v2186_v58 = vpop.f32.mrf.mxu1 }
 0x268   : > { %v2460_v62 = vpop.f32.mrf.mxu0  ;;  %v2196_v50 = vadd.f32 %v2186_v58, %v2107_v57 }
 0x269   : > { %v2471_v63 = vadd.f32 %v2460_v62, %v2195_v52 }
 0x26a   : > { %v2462_v32 = vpop.f32.mrf.mxu0 }
 0x26b   : > { %v2190_v55 = vpop.f32.mrf.mxu1  ;;  %v2472_v47 = vadd.f32 %v2462_v32, %v2196_v50 }
 0x26c   : > { %v2466_v17 = vpop.f32.mrf.mxu0  ;;  %v2197_v15 = vadd.f32 %v2190_v55, %v2108_v22 }
 0x26d   : > { %v2192_v33 = vpop.f32.mrf.mxu1 }
 0x26e   : > { %v2198_v49 = vadd.f32 %v2192_v33, %v2109_v1  ;;  %v2468_v54 = vpop.f32.mrf.mxu0  ;;  %v2473_v44 = vadd.f32 %v2466_v17, %v2197_v15 }
 0x270   : > { %v2474_v40 = vadd.f32 %v2468_v54, %v2198_v49 }
 0x2a7   : > { %v2541_v23 = vpop.f32.mrf.mxu1 }
 0x2a8   : > { %v2552_v8 = vadd.f32 %v2541_v23, %v2471_v63 }
 0x2a9   : > { %v2543_v51 = vpop.f32.mrf.mxu1 }
 0x2aa   : > { %v2560_v41 = vmul.f32 %v2556_v61, %v2552_v8  ;;  %v2553_v29 = vadd.f32 %v2543_v51, %v2472_v47 }
 0x2ab   : > { %v2547_v36 = vpop.f32.mrf.mxu1 }
 0x2ac   : > { %v2568_v37 = vadd.f32 %v2564_v31, %v2560_v41  ;;  %v2561_v3 = vmul.f32 %v2557_v2, %v2553_v29  ;;  %v2554_v56 = vadd.f32 %v2547_v36, %v2473_v44 }
 0x2ad   : > { %v2549_v7 = vpop.f32.mrf.mxu1 }
 0x2ae   : > { %2572 = vst [vmem:[%s224_s19] sm:$0xff] %v2568_v37  ;;  %v2569_v48 = vadd.f32 %v2565_v4, %v2561_v3  ;;  %v2562_v10 = vmul.f32 %v2558_v6, %v2554_v56  ;;  %v2555_v43 = vadd.f32 %v2549_v7, %v2474_v40 }
 0x2b0   : > { %2573 = vst [vmem:[%s224_s19 + $0x8] sm:$0xff] %v2569_v48  ;;  %v2570_v53 = vadd.f32 %v2566_v5, %v2562_v10  ;;  %v2563_v13 = vmul.f32 %v2559_v9, %v2555_v43 }
 0x2b2   : > { %2574 = vst [vmem:[%s224_s19 + $0x10] sm:$0xff] %v2570_v53  ;;  %v2571_v34 = vadd.f32 %v2567_v30, %v2563_v13 }
 0x2b4   : > { %2575 = vst [vmem:[%s224_s19 + $0x18] sm:$0xff] %v2571_v34 }
 0x2b5 PF: > { %s15_s18 = sadd.s32 1, %s2680_s18  }
 0x2b6   : > { %p12_p4 = scmp.ge.s32.totalorder %s15_s18, 4  }
 0x2b8   :  { %14 = sbr.rel (!%p12_p4) target bundleno = 1 (0x1), region = 70 }

</bundles_post_ra>
